<compile_context>
chip_gen: v7x
topology: tpu7x:2x2x1
jax: 0.10.0
libtpu: 0.0.40
codegen_flags: <defaults>
</compile_context>

<pallas_src>
import functools

import jax
import jax.numpy as jnp
from jax.experimental import pallas as pl
from jax.experimental.pallas import tpu as pltpu

ACTION_DIM = 2
ENVIRONMENT_DIM = 20
ROBOT_DIM = 4
STATE_DIM = ENVIRONMENT_DIM + ROBOT_DIM  # 24

H1 = 800
H2 = 600

# Lane-padded (multiple-of-128) hidden / matmul-output sizes. Zero padding is
# exact: padded hidden units compute relu(0*x + 0) = 0 and feed all-zero weight
# rows, padded output lanes compute tanh(0) = 0 and are sliced away.
H1P = 896        # 7 * 128
H2P = 640        # 5 * 128
OUTP = 128       # MXU-friendly N for the last matmul
OUT_STORE = 8    # lanes actually written back; real actions in [:, :ACTION_DIM]


def _round_up(x, m):
    return ((x + m - 1) // m) * m


def _cdiv(a, b):
    return -(-a // b)


def actor_kernel(s_ref, w1_ref, b1_ref, w2_ref, b2_ref, w3_ref, b3_ref, a_ref):
    s = s_ref[...]                                                    # (TB, 24) f32
    # Layer 1 in full f32 (K=24 -> negligible MXU cost, avoids truncating raw
    # lidar/robot observations to bf16).
    h1 = jnp.dot(s, w1_ref[...],
                 preferred_element_type=jnp.float32) + b1_ref[...]    # (TB, H1P)
    h1 = jnp.maximum(h1, 0.0)
    # Layers 2/3: bf16 weights + bf16 activations at the MXU inputs, f32 accum.
    h2 = jnp.dot(h1.astype(jnp.bfloat16), w2_ref[...],
                 preferred_element_type=jnp.float32) + b2_ref[...]    # (TB, H2P)
    h2 = jnp.maximum(h2, 0.0)
    out = jnp.dot(h2.astype(jnp.bfloat16), w3_ref[...],
                  preferred_element_type=jnp.float32) + b3_ref[...]   # (TB, OUTP)
    # Store only the first OUT_STORE lanes (16x less writeback than a 128-lane
    # f32 slab); lanes >= ACTION_DIM are exactly zero by construction.
    a_ref[...] = jnp.tanh(out[:, :OUT_STORE])


def init_params(key):
    """PyTorch nn.Linear-style init (U[-1/sqrt(fan_in), +1/sqrt(fan_in)]).

    Weights are stored as [in_features, out_features] (PyTorch weight.T) so the
    kernel computes plain x @ W + b."""
    def linear(key, fan_in, fan_out):
        kw, kb = jax.random.split(key)
        bound = 1.0 / jnp.sqrt(jnp.float32(fan_in))
        w = jax.random.uniform(kw, (fan_in, fan_out), jnp.float32, -bound, bound)
        b = jax.random.uniform(kb, (1, fan_out), jnp.float32, -bound, bound)
        return w, b

    k1, k2, k3 = jax.random.split(key, 3)
    w1, b1 = linear(k1, STATE_DIM, H1)      # layer_1
    w2, b2 = linear(k2, H1, H2)             # layer_2
    w3, b3 = linear(k3, H2, ACTION_DIM)     # layer_3
    return (w1, b1, w2, b2, w3, b3)


def prepare_params(params):
    """Zero-pad hidden/output dims to lane multiples.

    w2/w3 (the HBM-traffic-dominant weights) are cast to bf16; w1 stays f32 so
    layer 1 runs in full precision (it is tiny). Biases stay f32 (VPU only)."""
    w1, b1, w2, b2, w3, b3 = params

    def pad(x, rows, cols):
        return jnp.pad(x, ((0, rows - x.shape[0]), (0, cols - x.shape[1])))

    w1p = pad(w1, STATE_DIM, H1P)                        # f32
    b1p = pad(b1, 1, H1P)
    w2p = pad(w2, H1P, H2P).astype(jnp.bfloat16)
    b2p = pad(b2, 1, H2P)
    w3p = pad(w3, H2P, OUTP).astype(jnp.bfloat16)
    b3p = pad(b3, 1, OUTP)                               # padded lanes stay exactly 0
    return (w1p, b1p, w2p, b2p, w3p, b3p)


@functools.partial(jax.jit, static_argnames=("block_b",))
def actor_forward(s, prepared_params, *, block_b=512):
    B = s.shape[0]
    # Minimise dead-row padding: smallest number of tiles first, then round the
    # tile up to the 8-sublane granule.  Note for v7x: with the default
    # block_b, batches B <= 512 run as a single grid step (the 2nd TensorCore
    # stays idle); pass block_b=128/256 if 2-TC scaling at small B is desired
    # and the duplicated weight DMA per core is acceptable.
    n_tiles = _cdiv(B, block_b)
    tb = _round_up(_cdiv(B, n_tiles), 8)
    bp = n_tiles * tb
    if bp != B:
        s = jnp.pad(s, ((0, bp - B), (0, 0)))

    w1, b1, w2, b2, w3, b3 = prepared_params

    def const(i):      # weights / biases: same block every grid step -> stay resident
        return (0, 0)

    out = pl.pallas_call(
        actor_kernel,
        out_shape=jax.ShapeDtypeStruct((bp, OUT_STORE), jnp.float32),
        grid_spec=pltpu.PrefetchScalarGridSpec(
            num_scalar_prefetch=0,
            grid=(n_tiles,),
            in_specs=[
                pl.BlockSpec((tb, STATE_DIM), lambda i: (i, 0)),   # s: batch-tiled
                pl.BlockSpec((STATE_DIM, H1P), const),             # w1 (f32)
                pl.BlockSpec((1, H1P), const),                     # b1 (f32)
                pl.BlockSpec((H1P, H2P), const),                   # w2 (bf16)
                pl.BlockSpec((1, H2P), const),                     # b2 (f32)
                pl.BlockSpec((H2P, OUTP), const),                  # w3 (bf16)
                pl.BlockSpec((1, OUTP), const),                    # b3 (f32)
            ],
            out_specs=pl.BlockSpec((tb, OUT_STORE), lambda i: (i, 0)),
        ),
        compiler_params=pltpu.CompilerParams(
            dimension_semantics=("parallel",),   # batch tiles split across v7x TCs
            vmem_limit_bytes=32 << 20,           # ~10 MiB actual at tb=512; v7x-safe
        ),
    )(s, w1, b1, w2, b2, w3, b3)

    return out[:B, :ACTION_DIM]


def actor_forward_ref(s, params):
    """Pure-JAX f32 reference matching the PyTorch forward."""
    w1, b1, w2, b2, w3, b3 = params
    hp = jax.lax.Precision.HIGHEST
    h1 = jax.nn.relu(jnp.dot(s, w1, precision=hp) + b1)
    h2 = jax.nn.relu(jnp.dot(h1, w2, precision=hp) + b2)
    return jnp.tanh(jnp.dot(h2, w3, precision=hp) + b3)


def actor_forward_ref_mixed(s, prepared_params):
    """Pure-JAX reference mirroring the kernel's mixed-precision math."""
    w1, b1, w2, b2, w3, b3 = prepared_params
    hp = jax.lax.Precision.HIGHEST
    h1 = jax.nn.relu(jnp.dot(s, w1, preferred_element_type=jnp.float32,
                             precision=hp) + b1)
    h2 = jax.nn.relu(jnp.dot(h1.astype(jnp.bfloat16), w2,
                             preferred_element_type=jnp.float32) + b2)
    out = jnp.tanh(jnp.dot(h2.astype(jnp.bfloat16), w3,
                           preferred_element_type=jnp.float32) + b3)
    return out[:, :ACTION_DIM]


if __name__ == "__main__":
    key = jax.random.PRNGKey(0)
    k_params, k_s = jax.random.split(key)

    params = init_params(k_params)
    pparams = prepare_params(params)

    B = 8  # small batch, aligned to the 8-sublane vreg dimension
    s = jax.random.normal(k_s, (B, STATE_DIM), jnp.float32)

    a = actor_forward(s, pparams)
    a = jax.block_until_ready(a)
    assert a.shape == (B, ACTION_DIM)

    # Tight check against a reference mirroring the kernel's mixed-precision math.
    a_refm = actor_forward_ref_mixed(s, pparams)
    assert jnp.allclose(a, a_refm, atol=1e-3, rtol=1e-3)

    # Check against the full-f32 PyTorch-equivalent forward (tolerance accounts
    # for bf16 weights/activations at the layer-2/3 matmul inputs).
    a_ref32 = actor_forward_ref(s, params)
    assert jnp.allclose(a, a_ref32, atol=2e-2, rtol=2e-2)

    print("KERNEL_OK")
</pallas_src>

<mosaic_0001>
module attributes {stable_mosaic.version = 11 : i64} {
  func.func @actor_kernel(%arg0: i32, %arg1: memref<8x24xf32, #tpu.memory_space<vmem>>, %arg2: memref<24x896xf32, #tpu.memory_space<vmem>>, %arg3: memref<1x896xf32, #tpu.memory_space<vmem>>, %arg4: memref<896x640xbf16, #tpu.memory_space<vmem>>, %arg5: memref<1x640xf32, #tpu.memory_space<vmem>>, %arg6: memref<640x128xbf16, #tpu.memory_space<vmem>>, %arg7: memref<1x128xf32, #tpu.memory_space<vmem>>, %arg8: memref<8x8xf32, #tpu.memory_space<vmem>>) attributes {dimension_semantics = [#tpu.dimension_semantics<parallel>], iteration_bounds = array<i64: 1>, scalar_prefetch = 0 : i64, scratch_operands = 0 : i64, tpu.core_type = #tpu.core_type<tc>, window_params = [{transform_indices = @transform_0, window_bounds = array<i64: 8, 24>}, {pipeline_mode = #tpu.pipeline_mode<synchronous>, transform_indices = @transform_1, window_bounds = array<i64: 24, 896>}, {pipeline_mode = #tpu.pipeline_mode<synchronous>, transform_indices = @transform_2, window_bounds = array<i64: 1, 896>}, {pipeline_mode = #tpu.pipeline_mode<synchronous>, transform_indices = @transform_3, window_bounds = array<i64: 896, 640>}, {pipeline_mode = #tpu.pipeline_mode<synchronous>, transform_indices = @transform_4, window_bounds = array<i64: 1, 640>}, {pipeline_mode = #tpu.pipeline_mode<synchronous>, transform_indices = @transform_5, window_bounds = array<i64: 640, 128>}, {pipeline_mode = #tpu.pipeline_mode<synchronous>, transform_indices = @transform_6, window_bounds = array<i64: 1, 128>}, {transform_indices = @transform_7, window_bounds = array<i64: 8, 8>}]} {
    %c0 = arith.constant 0 : index
    %c0_0 = arith.constant 0 : index
    %0 = vector.load %arg1[%c0, %c0_0] : memref<8x24xf32, #tpu.memory_space<vmem>>, vector<8x24xf32>
    %c0_1 = arith.constant 0 : index
    %c0_2 = arith.constant 0 : index
    %1 = vector.load %arg2[%c0_1, %c0_2] : memref<24x896xf32, #tpu.memory_space<vmem>>, vector<24x896xf32>
    %cst = arith.constant dense<0.000000e+00> : vector<8x896xf32>
    %2 = tpu.matmul %0, %1, %cst {dimension_numbers = #tpu.dot_dimension_numbers<[1], [0], [0], [1], [0, 0, 1, 1], [], []>} : vector<8x24xf32>, vector<24x896xf32>, vector<8x896xf32> -> vector<8x896xf32>
    %c0_3 = arith.constant 0 : index
    %c0_4 = arith.constant 0 : index
    %3 = vector.load %arg3[%c0_3, %c0_4] : memref<1x896xf32, #tpu.memory_space<vmem>>, vector<1x896xf32>
    %4 = vector.broadcast %3 : vector<1x896xf32> to vector<8x896xf32>
    %5 = arith.addf %2, %4 : vector<8x896xf32>
    %cst_5 = arith.constant 0.000000e+00 : f32
    %6 = vector.broadcast %cst_5 : f32 to vector<8x896xf32>
    %7 = arith.maximumf %5, %6 : vector<8x896xf32>
    %8 = arith.truncf %7 : vector<8x896xf32> to vector<8x896xbf16>
    %c0_6 = arith.constant 0 : index
    %c0_7 = arith.constant 0 : index
    %9 = vector.load %arg4[%c0_6, %c0_7] : memref<896x640xbf16, #tpu.memory_space<vmem>>, vector<896x640xbf16>
    %cst_8 = arith.constant dense<0.000000e+00> : vector<8x640xf32>
    %10 = tpu.matmul %8, %9, %cst_8 {dimension_numbers = #tpu.dot_dimension_numbers<[1], [0], [0], [1], [0, 0, 1, 1], [], []>} : vector<8x896xbf16>, vector<896x640xbf16>, vector<8x640xf32> -> vector<8x640xf32>
    %c0_9 = arith.constant 0 : index
    %c0_10 = arith.constant 0 : index
    %11 = vector.load %arg5[%c0_9, %c0_10] : memref<1x640xf32, #tpu.memory_space<vmem>>, vector<1x640xf32>
    %12 = vector.broadcast %11 : vector<1x640xf32> to vector<8x640xf32>
    %13 = arith.addf %10, %12 : vector<8x640xf32>
    %cst_11 = arith.constant 0.000000e+00 : f32
    %14 = vector.broadcast %cst_11 : f32 to vector<8x640xf32>
    %15 = arith.maximumf %13, %14 : vector<8x640xf32>
    %16 = arith.truncf %15 : vector<8x640xf32> to vector<8x640xbf16>
    %c0_12 = arith.constant 0 : index
    %c0_13 = arith.constant 0 : index
    %17 = vector.load %arg6[%c0_12, %c0_13] : memref<640x128xbf16, #tpu.memory_space<vmem>>, vector<640x128xbf16>
    %cst_14 = arith.constant dense<0.000000e+00> : vector<8x128xf32>
    %18 = tpu.matmul %16, %17, %cst_14 {dimension_numbers = #tpu.dot_dimension_numbers<[1], [0], [0], [1], [0, 0, 1, 1], [], []>} : vector<8x640xbf16>, vector<640x128xbf16>, vector<8x128xf32> -> vector<8x128xf32>
    %c0_15 = arith.constant 0 : index
    %c0_16 = arith.constant 0 : index
    %19 = vector.load %arg7[%c0_15, %c0_16] : memref<1x128xf32, #tpu.memory_space<vmem>>, vector<1x128xf32>
    %20 = vector.broadcast %19 : vector<1x128xf32> to vector<8x128xf32>
    %21 = arith.addf %18, %20 : vector<8x128xf32>
    %22 = vector.extract_strided_slice %21 {offsets = [0, 0], sizes = [8, 8], strides = [1, 1]} : vector<8x128xf32> to vector<8x8xf32>
    %23 = math.tanh %22 : vector<8x8xf32>
    %c0_17 = arith.constant 0 : index
    %c0_18 = arith.constant 0 : index
    %24 = vector.load %arg8[%c0_17, %c0_18] : memref<8x8xf32, #tpu.memory_space<vmem>>, vector<8x8xf32>
    tpu.vector_store %arg8[%c0_17, %c0_18], %23 {strides = array<i32>} : memref<8x8xf32, #tpu.memory_space<vmem>>, vector<8x8xf32>,
    return
  }
  func.func @transform_0(%arg0: i32) -> (i32, i32) {
    %c0_i32 = arith.constant 0 : i32
    %c0_i32_0 = arith.constant 0 : i32
    return %arg0, %c0_i32 : i32, i32
  }
  func.func @transform_1(%arg0: i32) -> (i32, i32) {
    %c0_i32 = arith.constant 0 : i32
    %c0_i32_0 = arith.constant 0 : i32
    %c0_i32_1 = arith.constant 0 : i32
    return %c0_i32, %c0_i32_0 : i32, i32
  }
  func.func @transform_2(%arg0: i32) -> (i32, i32) {
    %c0_i32 = arith.constant 0 : i32
    %c0_i32_0 = arith.constant 0 : i32
    %c0_i32_1 = arith.constant 0 : i32
    return %c0_i32, %c0_i32_0 : i32, i32
  }
  func.func @transform_3(%arg0: i32) -> (i32, i32) {
    %c0_i32 = arith.constant 0 : i32
    %c0_i32_0 = arith.constant 0 : i32
    %c0_i32_1 = arith.constant 0 : i32
    return %c0_i32, %c0_i32_0 : i32, i32
  }
  func.func @transform_4(%arg0: i32) -> (i32, i32) {
    %c0_i32 = arith.constant 0 : i32
    %c0_i32_0 = arith.constant 0 : i32
    %c0_i32_1 = arith.constant 0 : i32
    return %c0_i32, %c0_i32_0 : i32, i32
  }
  func.func @transform_5(%arg0: i32) -> (i32, i32) {
    %c0_i32 = arith.constant 0 : i32
    %c0_i32_0 = arith.constant 0 : i32
    %c0_i32_1 = arith.constant 0 : i32
    return %c0_i32, %c0_i32_0 : i32, i32
  }
  func.func @transform_6(%arg0: i32) -> (i32, i32) {
    %c0_i32 = arith.constant 0 : i32
    %c0_i32_0 = arith.constant 0 : i32
    %c0_i32_1 = arith.constant 0 : i32
    return %c0_i32, %c0_i32_0 : i32, i32
  }
  func.func @transform_7(%arg0: i32) -> (i32, i32) {
    %c0_i32 = arith.constant 0 : i32
    %c0_i32_0 = arith.constant 0 : i32
    return %arg0, %c0_i32 : i32, i32
  }
}

</mosaic_0001>

<bundles_post_ra>
// kernel: actor_forward.1
= control target key start
LH: loop header
LB: loop body
LE: loop exit
PB: predicated region body
PF: predicated region fallthrough
CT: control target
= control target key end

     0   :  { %12 = vsyncpa [#allocation3], 0  ;;  %s4670_s0 = inlined_call_operand.hbm [shape: f32[8,24], index: 0, kind: input, shape index: {}]   ;;  %s4671_s1 = inlined_call_operand.hbm [shape: f32[24,896], index: 1, kind: input, shape index: {}]   ;;  %s4672_s2 = inlined_call_operand.hbm [shape: f32[1,896], index: 2, kind: input, shape index: {}]   ;;  %s4673_s3 = inlined_call_operand.hbm [shape: bf16[896,640], index: 3, kind: input, shape index: {}]   ;;  %s4674_s4 = inlined_call_operand.hbm [shape: f32[1,640], index: 4, kind: input, shape index: {}]   ;;  %s4675_s5 = inlined_call_operand.hbm [shape: bf16[640,128], index: 5, kind: input, shape index: {}]   ;;  %s4676_s6 = inlined_call_operand.hbm [shape: f32[1,128], index: 6, kind: input, shape index: {}]   ;;  %s4677_s7 = inlined_call_operand.vmem [shape: f32[8,8], index: 7, kind: output, shape index: {}]  }
   0x1   :  { %13 = vsyncpa [#allocation5], 0 }
   0x2   :  { %14 = vsyncpa [#allocation8], 0 }
   0x3   :  { %15 = vsyncpa [#allocation11], 0  ;;  %s4411_s24 = smov [#allocation4]   ;;  %s4249_s28 = scalar_lea.hbm %s4671_s1, 2688 }
   0x4   :  { %s31_s25 = sshll.u32 %s4411_s24, 4  ;;  %p4250_p0 = scmp.ne.s32.totalorder %s4671_s1, %s4249_s28  ;;  %s32_s25 = int_to_ptr.vmem [resolvable:$true] %s31_s25 }
   0x5   :  { %p4253_p1 = scmp.lt.u32.totalorder %s4249_s28, %s4671_s1 }
   0x7   :  { %p4255_p2 = pnand %p4253_p1, %p4250_p0 }
   0x9   :  { %4258 = shalt.err (!%p4255_p2)
}
   0xa   :  { %s4259_s10 = scalar_lea.vmem %s32_s25, 2688  ;;  %p4264_p4 = scmp.lt.s32.totalorder %s32_s25, %s32_s25 }
   0xb   :  { %p4260_p3 = scmp.ne.s32.totalorder %s32_s25, %s4259_s10  ;;  %p4265_p5 = scmp.lt.s32.totalorder %s4259_s10, %s4259_s10 }
   0xd   :  { %p4266_p6 = por %p4265_p5, %p4264_p4 }
   0xf   :  { %p4267_p7 = pnand %p4266_p6, %p4260_p3 }
  0x11   :  { %4270 = shalt.err (!%p4267_p7)
}
  0x12   :  { %s4412_s11 = smov 896   ;;  %s4413_s12 = smov 56  }
  0x13   :  { %37 = dma.hbm_to_vmem [thread:$0]  %s4671_s1, 2688, %s32_s25, [#allocation5], %s4412_s11, %s4412_s11, %s4413_s12  }
  0x14   :  { %s4414_s15 = smov [#allocation7]   ;;  %s4271_s19 = scalar_lea.hbm %s4673_s3, 35840 }
  0x15   :  { %s53_s16 = sshll.u32 %s4414_s15, 4  ;;  %p4272_p8 = scmp.ne.s32.totalorder %s4673_s3, %s4271_s19  ;;  %s54_s16 = int_to_ptr.vmem [resolvable:$true] %s53_s16 }
  0x16   :  { %p4275_p9 = scmp.lt.u32.totalorder %s4271_s19, %s4673_s3 }
  0x18   :  { %p4277_p10 = pnand %p4275_p9, %p4272_p8 }
  0x1a   :  { %4280 = shalt.err (!%p4277_p10)
}
  0x1b   :  { %s4281_s24 = scalar_lea.vmem %s54_s16, 35840  ;;  %p4286_p12 = scmp.lt.s32.totalorder %s54_s16, %s54_s16 }
  0x1c   :  { %p4282_p11 = scmp.ne.s32.totalorder %s54_s16, %s4281_s24  ;;  %p4287_p13 = scmp.lt.s32.totalorder %s4281_s24, %s4281_s24 }
  0x1e   :  { %p4288_p0 = por %p4287_p13, %p4286_p12 }
  0x20   :  { %p4289_p1 = pnand %p4288_p0, %p4282_p11 }
  0x22   :  { %4292 = shalt.err (!%p4289_p1)
}
  0x23   :  { %s4415_s1 = smov 320   ;;  %s4416_s25 = smov 20  }
  0x24   :  { %59 = dma.hbm_to_vmem [thread:$0]  %s4673_s3, 35840, %s54_s16, [#allocation8], %s4415_s1, %s4415_s1, %s4416_s25  }
  0x25   :  { %s4417_s28 = smov [#allocation10]   ;;  %s4293_s9 = scalar_lea.hbm %s4675_s5, 5120 }
  0x26   :  { %s75_s29 = sshll.u32 %s4417_s28, 4  ;;  %p4294_p2 = scmp.ne.s32.totalorder %s4675_s5, %s4293_s9  ;;  %s76_s29 = int_to_ptr.vmem [resolvable:$true] %s75_s29 }
  0x27   :  { %p4297_p3 = scmp.lt.u32.totalorder %s4293_s9, %s4675_s5 }
  0x29   :  { %p4299_p4 = pnand %p4297_p3, %p4294_p2 }
  0x2b   :  { %4302 = shalt.err (!%p4299_p4)
}
  0x2c   :  { %s4303_s14 = scalar_lea.vmem %s76_s29, 5120  ;;  %p4308_p6 = scmp.lt.s32.totalorder %s76_s29, %s76_s29 }
  0x2d   :  { %p4304_p5 = scmp.ne.s32.totalorder %s76_s29, %s4303_s14  ;;  %p4309_p7 = scmp.lt.s32.totalorder %s4303_s14, %s4303_s14 }
  0x2f   :  { %p4310_p8 = por %p4309_p7, %p4308_p6 }
  0x31   :  { %p4311_p9 = pnand %p4310_p8, %p4304_p5 }
  0x33   :  { %4314 = shalt.err (!%p4311_p9)
}
  0x34   :  { %s4418_s3 = smov 64   ;;  %s4419_s15 = smov 4  }
  0x35   :  { %81 = dma.hbm_to_vmem [thread:$0]  %s4675_s5, 5120, %s76_s29, [#allocation11], %s4418_s3, %s4418_s3, %s4419_s15  }
  0x36   :  { %s4420_s18 = smov [#allocation2]   ;;  %s4421_s20 = smov [#allocation6]  }
  0x37   :  { %s22_s19 = sshll.u32 %s4420_s18, 4  ;;  %s44_s21 = sshll.u32 %s4421_s20, 4  ;;  %s23_s19 = int_to_ptr.vmem [resolvable:$true] %s22_s19  ;;  %s45_s21 = int_to_ptr.vmem [resolvable:$true] %s44_s21 }
  0x38   :  { %s4315_s24 = scalar_lea.hbm %s4670_s0, 128 }
  0x39   :  { %p4316_p10 = scmp.ne.s32.totalorder %s4670_s0, %s4315_s24  ;;  %p4319_p11 = scmp.lt.u32.totalorder %s4315_s24, %s4670_s0 }
  0x3b   :  { %p4321_p12 = pnand %p4319_p11, %p4316_p10 }
  0x3d   :  { %4324 = shalt.err (!%p4321_p12)
}
  0x3e   :  { %s4325_s5 = scalar_lea.vmem %s23_s19, 128  ;;  %p4330_p0 = scmp.lt.s32.totalorder %s23_s19, %s23_s19 }
  0x3f   :  { %p4326_p13 = scmp.ne.s32.totalorder %s23_s19, %s4325_s5  ;;  %p4331_p1 = scmp.lt.s32.totalorder %s4325_s5, %s4325_s5 }
  0x41   :  { %p4332_p2 = por %p4331_p1, %p4330_p0 }
  0x43   :  { %p4333_p3 = pnand %p4332_p2, %p4326_p13 }
  0x45   :  { %4336 = shalt.err (!%p4333_p3)
}
  0x46   :  { %25 = dma.hbm_to_vmem [thread:$0]  %s4670_s0, 128, %s23_s19, [#allocation3]  }
  0x47   :  { %s4337_s9 = scalar_lea.hbm %s4672_s2, 112 }
  0x48   :  { %p4338_p4 = scmp.ne.s32.totalorder %s4672_s2, %s4337_s9  ;;  %p4341_p5 = scmp.lt.u32.totalorder %s4337_s9, %s4672_s2 }
  0x4a   :  { %p4343_p6 = pnand %p4341_p5, %p4338_p4 }
  0x4c   :  { %4346 = shalt.err (!%p4343_p6)
}
  0x4d   :  { %s4347_s14 = scalar_lea.vmem %s45_s21, 112  ;;  %s4351_s3 = scalar_lea.vmem %s45_s21, 128 }
  0x4e   :  { %p4348_p7 = scmp.ne.s32.totalorder %s45_s21, %s4347_s14  ;;  %p4352_p8 = scmp.lt.s32.totalorder %s45_s21, %s45_s21 }
  0x4f   :  { %p4353_p9 = scmp.lt.s32.totalorder %s4351_s3, %s4347_s14 }
  0x51   :  { %p4354_p10 = por %p4353_p9, %p4352_p8 }
  0x53   :  { %p4355_p11 = pnand %p4354_p10, %p4348_p7 }
  0x55   :  { %4358 = shalt.err (!%p4355_p11)
}
  0x56   :  { %47 = dma.hbm_to_vmem [thread:$0]  %s4672_s2, 112, %s45_s21, [#allocation5]  }
  0x57   :  { %s4422_s16 = smov [#allocation9]   ;;  %s4423_s18 = smov [#allocation12]  }
  0x58   :  { %s66_s17 = sshll.u32 %s4422_s16, 4  ;;  %s88_s19 = sshll.u32 %s4423_s18, 4  ;;  %s67_s17 = int_to_ptr.vmem [resolvable:$true] %s66_s17  ;;  %s89_s19 = int_to_ptr.vmem [resolvable:$true] %s88_s19 }
  0x59   :  { %s4359_s23 = scalar_lea.hbm %s4674_s4, 80 }
  0x5a   :  { %p4360_p12 = scmp.ne.s32.totalorder %s4674_s4, %s4359_s23  ;;  %p4363_p13 = scmp.lt.u32.totalorder %s4359_s23, %s4674_s4 }
  0x5c   :  { %p4365_p0 = pnand %p4363_p13, %p4360_p12 }
  0x5e   :  { %4368 = shalt.err (!%p4365_p0)
}
  0x5f   :  { %s4369_s2 = scalar_lea.vmem %s67_s17, 80  ;;  %s4373_s21 = scalar_lea.vmem %s67_s17, 96 }
  0x60   :  { %p4370_p1 = scmp.ne.s32.totalorder %s67_s17, %s4369_s2  ;;  %p4374_p2 = scmp.lt.s32.totalorder %s67_s17, %s67_s17 }
  0x61   :  { %p4375_p3 = scmp.lt.s32.totalorder %s4373_s21, %s4369_s2 }
  0x63   :  { %p4376_p4 = por %p4375_p3, %p4374_p2 }
  0x65   :  { %p4377_p5 = pnand %p4376_p4, %p4370_p1 }
  0x67   :  { %4380 = shalt.err (!%p4377_p5)
}
  0x68   :  { %69 = dma.hbm_to_vmem [thread:$0]  %s4674_s4, 80, %s67_s17, [#allocation8]  }
  0x69   :  { %s4381_s30 = scalar_lea.hbm %s4676_s6, 16 }
  0x6a   :  { %p4382_p6 = scmp.ne.s32.totalorder %s4676_s6, %s4381_s30  ;;  %p4385_p7 = scmp.lt.u32.totalorder %s4381_s30, %s4676_s6 }
  0x6c   :  { %p4387_p8 = pnand %p4385_p7, %p4382_p6 }
  0x6e   :  { %4390 = shalt.err (!%p4387_p8)
}
  0x6f   :  { %s4391_s12 = scalar_lea.vmem %s89_s19, 16  ;;  %s4395_s13 = scalar_lea.vmem %s89_s19, 32 }
  0x70   :  { %p4392_p9 = scmp.ne.s32.totalorder %s89_s19, %s4391_s12  ;;  %p4396_p10 = scmp.lt.s32.totalorder %s89_s19, %s89_s19 }
  0x71   :  { %p4397_p11 = scmp.lt.s32.totalorder %s4395_s13, %s4391_s12 }
  0x73   :  { %p4398_p12 = por %p4397_p11, %p4396_p10 }
  0x75   :  { %p4399_p13 = pnand %p4398_p12, %p4392_p9 }
  0x77   :  { %4402 = shalt.err (!%p4399_p13)
}
  0x78   :  { %91 = dma.hbm_to_vmem [thread:$0]  %s4676_s6, 16, %s89_s19, [#allocation11]  }
  0x79   :  { %4403 = dma.done.wait [#allocation3], 128  }
  0x7a   :  { %4404 = vsyncadd [#allocation3], 4294967168 }
  0x7b   :  { %4405 = dma.done.wait [#allocation5], 2800  }
  0x7c   :  { %4406 = vsyncadd [#allocation5], 4294964496 }
  0x7d   :  { %4407 = dma.done.wait [#allocation8], 35920  }
  0x7e   :  { %4408 = vsyncadd [#allocation8], 4294931376 }
  0x7f   :  { %4409 = dma.done.wait [#allocation11], 5136  }
  0x80   :  { %4410 = vsyncadd [#allocation11], 4294962160  ;;  %v4424_v0 = vmov 0.0   ;;  %v116_v1 = vld [vmem:[#allocation4 + $0x8] sm:$0xff]  ;;  %v123_v2 = vld [vmem:[#allocation4 + $0x40] sm:$0xff]  ;;  %vm173_vm0 = vcmask 195584  }
  0x81   :  { %241 = vmatprep.mubr.f32.mxu1 %v4424_v0  ;;  %v115_v3 = vld [vmem:[#allocation4] sm:$0xff]  ;;  %v3755_v4 = vpack.c.bf16 %v123_v2, %v116_v1  ;;  %v122_v5 = vld [vmem:[#allocation4 + $0x38] sm:$0xff]  ;;  %v125_v9 = vld [vmem:[#allocation4 + $0x50] sm:$0xff]  ;;  %v4425_v36 = vmov 0.0|0.0   ;;  %vm4426_vm1 = vmmov 0   ;;  %vm3239_vm2 = vcmask 64512  }
  0x82   :  { %v3757_v6 = vpack.c.bf16 %v122_v5, %v115_v3  ;;  %v130_v7 = vld [vmem:[#allocation4 + $0x78] sm:$0xff]  ;;  %v117_v10 = vld [vmem:[#allocation4 + $0x10] sm:$0xff]  ;;  %v124_v11 = vld [vmem:[#allocation4 + $0x48] sm:$0xff] }
  0x83   :  { %v118_v8 = vld [vmem:[#allocation4 + $0x18] sm:$0xff]  ;;  %3756 = vmatprep.subr.bf16.mxu1 %v3755_v4  ;;  %v129_v12 = vld [vmem:[#allocation4 + $0x70] sm:$0xff]  ;;  %v3761_v15 = vpack.c.bf16 %v124_v11, %v117_v10  ;;  %v132_v16 = vld [vmem:[#allocation4 + $0x88] sm:$0xff] }
  0x84   :  { %3758 = vmatpush1.bf16.msra.mxu1 %v3757_v6  ;;  %v3759_v13 = vpack.c.bf16 %v125_v9, %v118_v8  ;;  %v114_v14 = vld [vmem:[#allocation2] sm:$0xff]  ;;  %v120_v17 = vld [vmem:[#allocation4 + $0x28] sm:$0xff]  ;;  %v127_v18 = vld [vmem:[#allocation4 + $0x60] sm:$0xff] }
  0x85   :  { %181 = vmatprep.subr.mxu1 %v130_v7  ;;  %v3815_v19 = vld [vmem:[#allocation7 + $0x4] ss:$20 sps:$4 sm:$0xff]   ;;  %v119_v20 = vld [vmem:[#allocation4 + $0x20] sm:$0xff]  ;;  %v126_v21 = vld [vmem:[#allocation4 + $0x58] sm:$0xff]  ;;  %v3763_v25 = vpack.c.bf16 %v127_v18, %v120_v17 }
  0x86   :  { %v3820_v22 = vld [vmem:[#allocation7] ss:$20 sps:$4 sm:$0xff]   ;;  %2293 = vmatprep.subr.bf16.mxu0 %v3815_v19  ;;  %v3765_v26 = vpack.c.bf16 %v126_v21, %v119_v20  ;;  %v134_v27 = vld [vmem:[#allocation4 + $0x98] sm:$0xff]  ;;  %v128_v31 = vld [vmem:[#allocation4 + $0x68] sm:$0xff] }
  0x87   :  { %v3821_v23 = vld [vmem:[#allocation7 + $0x2c] ss:$20 sps:$4 sm:$0xff]   ;;  %v131_v24 = vld [vmem:[#allocation4 + $0x80] sm:$0xff]  ;;  %2294 = vmatpush1.bf16.msra.mxu0 %v3820_v22  ;;  %v3826_v28 = vld [vmem:[#allocation7 + $0x28] ss:$20 sps:$4 sm:$0xff]  }
  0x88   :  { %182 = vmatpush1.msra.mxu1 %v129_v12  ;;  %2295 = vmatprep.subr.bf16.mxu0 %v3821_v23  ;;  %v121_v29 = vld [vmem:[#allocation4 + $0x30] sm:$0xff]  ;;  %v3827_v30 = vld [vmem:[#allocation7 + $0x54] ss:$20 sps:$4 sm:$0xff]   ;;  %v3833_v35 = vld [vmem:[#allocation7 + $0x7c] ss:$20 sps:$4 sm:$0xff]  }
  0x89   :  { %3249 = vmatmul.mubr.msk.f32.vlgmr.msra.gmra.mrb[0].mxu1 %vm173_vm0, %v114_v14  ;;  %3760 = vmatprep.subr.bf16.mxu1 %v3759_v13  ;;  %v133_v32 = vld [vmem:[#allocation4 + $0x90] sm:$0xff]  ;;  %v3768_v33 = vpack.c.bf16 %v128_v31, %v121_v29  ;;  %v135_v37 = vld [vmem:[#allocation4 + $0xa0] sm:$0xff]  ;;  %v3817_v38 = vld [vmem:[#allocation7 + $0x8] ss:$20 sps:$4 sm:$0xff]  }
  0x8a   :  { %3762 = vmatpush1.bf16.msra.mxu1 %v3761_v15  ;;  %312 = vmatprep.mubr.f32.mxu1 %v4424_v0  ;;  %v3832_v34 = vld [vmem:[#allocation7 + $0x50] ss:$20 sps:$4 sm:$0xff]   ;;  %v3819_v39 = vld [vmem:[#allocation7 + $0xc] ss:$20 sps:$4 sm:$0xff]   ;;  %v3825_v41 = vld [vmem:[#allocation7 + $0x34] ss:$20 sps:$4 sm:$0xff]  }
  0x8b   :  { %252 = vmatprep.subr.mxu1 %v132_v16  ;;  %2296 = vmatpush1.bf16.msra.mxu0 %v3826_v28  ;;  %v3838_v40 = vld [vmem:[#allocation7 + $0x78] ss:$20 sps:$4 sm:$0xff]   ;;  %v3823_v43 = vld [vmem:[#allocation7 + $0x30] ss:$20 sps:$4 sm:$0xff]   ;;  %v3844_v45 = vld [vmem:[#allocation7 + $0xa0] ss:$20 sps:$4 sm:$0xff]  }
  0x8c   :  { %2297 = vmatprep.subr.bf16.mxu0 %v3827_v30  ;;  %v3839_v42 = vld [vmem:[#allocation7 + $0xa4] ss:$20 sps:$4 sm:$0xff]   ;;  %v3831_v44 = vld [vmem:[#allocation7 + $0x5c] ss:$20 sps:$4 sm:$0xff]   ;;  %v3845_v46 = vld [vmem:[#allocation7 + $0xcc] ss:$20 sps:$4 sm:$0xff]  }
  0x8d   :  { %v3829_v47 = vld [vmem:[#allocation7 + $0x58] ss:$20 sps:$4 sm:$0xff]   ;;  %v3850_v48 = vld [vmem:[#allocation7 + $0xc8] ss:$20 sps:$4 sm:$0xff]   ;;  %v3835_v51 = vld [vmem:[#allocation7 + $0x80] ss:$20 sps:$4 sm:$0xff]  }
  0x8e   :  { %253 = vmatpush1.msra.mxu1 %v131_v24  ;;  %v3837_v49 = vld [vmem:[#allocation7 + $0x84] ss:$20 sps:$4 sm:$0xff]   ;;  %v3851_v50 = vld [vmem:[#allocation7 + $0xf4] ss:$20 sps:$4 sm:$0xff]   ;;  %v3843_v52 = vld [vmem:[#allocation7 + $0xac] ss:$20 sps:$4 sm:$0xff]  }
  0x8f   :  { %3250 = vmatmul.mubr.msk.f32.vlgmr.msra.gmra.mrb[2].mxu1 %vm173_vm0, %v114_v14  ;;  %3764 = vmatprep.subr.bf16.mxu1 %v3763_v25  ;;  %v3856_v53 = vld [vmem:[#allocation7 + $0xf0] ss:$20 sps:$4 sm:$0xff]   ;;  %v3841_v55 = vld [vmem:[#allocation7 + $0xa8] ss:$20 sps:$4 sm:$0xff]   ;;  %v3862_v56 = vld [vmem:[#allocation7 + $0x118] ss:$20 sps:$4 sm:$0xff]  }
  0x90   :  { %3766 = vmatpush1.bf16.msra.mxu1 %v3765_v26  ;;  %383 = vmatprep.mubr.f32.mxu1 %v4424_v0  ;;  %v3857_v54 = vld [vmem:[#allocation7 + $0x11c] ss:$20 sps:$4 sm:$0xff]   ;;  %v3849_v57 = vld [vmem:[#allocation7 + $0xd4] ss:$20 sps:$4 sm:$0xff]   ;;  %v3863_v58 = vld [vmem:[#allocation7 + $0x144] ss:$20 sps:$4 sm:$0xff]  }
  0x91   :  { %323 = vmatprep.subr.mxu1 %v134_v27  ;;  %2298 = vmatpush1.bf16.msra.mxu0 %v3832_v34  ;;  %v3847_v59 = vld [vmem:[#allocation7 + $0xd0] ss:$20 sps:$4 sm:$0xff]   ;;  %v3868_v61 = vld [vmem:[#allocation7 + $0x140] ss:$20 sps:$4 sm:$0xff]   ;;  %v3853_v63 = vld [vmem:[#allocation7 + $0xf8] ss:$20 sps:$4 sm:$0xff]   ;;  %v138_v34 = vlaneseq }
  0x92   :  { %2299 = vmatprep.subr.bf16.mxu0 %v3833_v35  ;;  %v3855_v60 = vld [vmem:[#allocation7 + $0xfc] ss:$20 sps:$4 sm:$0xff]   ;;  %v3869_v62 = vld [vmem:[#allocation7 + $0x16c] ss:$20 sps:$4 sm:$0xff]   ;;  %v3861_v2 = vld [vmem:[#allocation7 + $0x124] ss:$20 sps:$4 sm:$0xff]  }
  0x93   :  { %v3874_v1 = vld [vmem:[#allocation7 + $0x168] ss:$20 sps:$4 sm:$0xff]   ;;  %v3859_v4 = vld [vmem:[#allocation7 + $0x120] ss:$20 sps:$4 sm:$0xff]   ;;  %v3880_v5 = vld [vmem:[#allocation7 + $0x190] ss:$20 sps:$4 sm:$0xff]  }
  0x94   :  { %324 = vmatpush1.msra.mxu1 %v133_v32  ;;  %v3875_v3 = vld [vmem:[#allocation7 + $0x194] ss:$20 sps:$4 sm:$0xff]   ;;  %v3867_v6 = vld [vmem:[#allocation7 + $0x14c] ss:$20 sps:$4 sm:$0xff]   ;;  %v3881_v7 = vld [vmem:[#allocation7 + $0x1bc] ss:$20 sps:$4 sm:$0xff]  }
  0x95   :  { %3251 = vmatmul.mubr.msk.f32.vlgmr.msra.gmra.mrb[4].mxu1 %vm173_vm0, %v114_v14  ;;  %3767 = vmatprep.subr.bf16.mxu1 %v4425_v36  ;;  %v3865_v8 = vld [vmem:[#allocation7 + $0x148] ss:$20 sps:$4 sm:$0xff]   ;;  %v3886_v9 = vld [vmem:[#allocation7 + $0x1b8] ss:$20 sps:$4 sm:$0xff]   ;;  %v3871_v12 = vld [vmem:[#allocation7 + $0x170] ss:$20 sps:$4 sm:$0xff]  }
  0x96   :  { %3769 = vmatpush3.bf16.msra.mxu1 %v3768_v33  ;;  %3712 = vmatprep.mubr.msk.f32.mxu1 %vm4426_vm1, %v4424_v0  ;;  %v3873_v10 = vld [vmem:[#allocation7 + $0x174] ss:$20 sps:$4 sm:$0xff]   ;;  %v3887_v11 = vld [vmem:[#allocation7 + $0x1e4] ss:$20 sps:$4 sm:$0xff]   ;;  %v3893_v15 = vld [vmem:[#allocation7 + $0x20c] ss:$20 sps:$4 sm:$0xff]  }
  0x97   :  { %3710 = vmatprep.subr.mxu1 %v4424_v0  ;;  %2300 = vmatpush1.bf16.msra.mxu0 %v3838_v40  ;;  %v3892_v13 = vld [vmem:[#allocation7 + $0x1e0] ss:$20 sps:$4 sm:$0xff]   ;;  %v3877_v16 = vld [vmem:[#allocation7 + $0x198] ss:$20 sps:$4 sm:$0xff]   ;;  %v3898_v17 = vld [vmem:[#allocation7 + $0x208] ss:$20 sps:$4 sm:$0xff]  }
  0x98   :  { %2301 = vmatprep.subr.bf16.mxu0 %v3839_v42  ;;  %v3885_v18 = vld [vmem:[#allocation7 + $0x1c4] ss:$20 sps:$4 sm:$0xff]   ;;  %v3883_v19 = vld [vmem:[#allocation7 + $0x1c0] ss:$20 sps:$4 sm:$0xff]   ;;  %v3889_v21 = vld [vmem:[#allocation7 + $0x1e8] ss:$20 sps:$4 sm:$0xff]  }
  0x99   :  { %v3891_v20 = vld [vmem:[#allocation7 + $0x1ec] ss:$20 sps:$4 sm:$0xff]   ;;  %v3897_v22 = vld [vmem:[#allocation7 + $0x214] ss:$20 sps:$4 sm:$0xff]   ;;  %v3895_v23 = vld [vmem:[#allocation7 + $0x210] ss:$20 sps:$4 sm:$0xff]  }
  0x9a   :  { %3711 = vmatpush3.msra.mxu1 %v135_v37  ;;  %v3899_v24 = vld [vmem:[#allocation7 + $0x234] ss:$20 sps:$4 sm:$0xff]   ;;  %v3903_v25 = vld [vmem:[#allocation7 + $0x23c] ss:$20 sps:$4 sm:$0xff]   ;;  %v3901_v26 = vld [vmem:[#allocation7 + $0x238] ss:$20 sps:$4 sm:$0xff]  }
  0x9b   :  { %2457 = vmatprep.subr.bf16.mxu1 %v3819_v39  ;;  %3713 = vmatmul.mubr.msk.f32.vlgmr.msra.gmra.mrb[6].mxu1 %vm173_vm0, %v114_v14  ;;  %v3879_v14 = vld [vmem:[#allocation7 + $0x19c] ss:$20 sps:$4 sm:$0xff]   ;;  %v3909_v29 = vld [vmem:[#allocation7 + $0x264] ss:$20 sps:$4 sm:$0xff]   ;;  %v3907_v30 = vld [vmem:[#allocation7 + $0x260] ss:$20 sps:$4 sm:$0xff]  }
  0x9c   :  { %2458 = vmatpush1.bf16.msra.mxu1 %v3817_v38  ;;  %2302 = vmatpush1.bf16.msra.mxu0 %v3844_v45  ;;  %v3904_v27 = vld [vmem:[#allocation7 + $0x230] ss:$20 sps:$4 sm:$0xff]   ;;  %v3910_v31 = vld [vmem:[#allocation7 + $0x258] ss:$20 sps:$4 sm:$0xff]   ;;  %v4562_v35 = vshrl.u32 %v138_v34, 7 }
  0x9d   :  { %2459 = vmatprep.subr.bf16.mxu1 %v3825_v41  ;;  %2303 = vmatprep.subr.bf16.mxu0 %v3845_v46  ;;  %v3905_v28 = vld [vmem:[#allocation7 + $0x25c] ss:$20 sps:$4 sm:$0xff]   ;;  %v3913_v32 = vld [vmem:[#allocation7 + $0x284] ss:$20 sps:$4 sm:$0xff]   ;;  %v3916_v33 = vld [vmem:[#allocation7 + $0x28c] ss:$20 sps:$4 sm:$0xff]  }
  0x9e   :  { %v140_v36 = vsub.s32 0, %v4562_v35  ;;  %v4565_v37 = vld [vmem:[#allocation6] sm:$0xff]  ;;  %v144_v38 = vsub.s32 1, %v4562_v35  ;;  %v152_v42 = vsub.s32 3, %v4562_v35  ;;  %v3968_v34 = vld [vmem:[#allocation7 + $0x3f0] ss:$20 sps:$4 sm:$0xff]  }
  0xa0   :  { %2460 = vmatpush1.bf16.msra.mxu1 %v3823_v43  ;;  %2304 = vmatpush1.bf16.msra.mxu0 %v3850_v48  ;;  %v141_v39 = vrot.slane %v4565_v37, %v140_v36  ;;  %v145_v40 = vrot.slane %v4565_v37, %v144_v38  ;;  %v153_v48 = vrot.slane %v4565_v37, %v152_v42 }
  0xa1   :  { %2461 = vmatprep.subr.bf16.mxu1 %v3831_v44  ;;  %2305 = vmatprep.subr.bf16.mxu0 %v3851_v50  ;;  %v3911_v50 = vld [vmem:[#allocation7 + $0x280] ss:$20 sps:$4 sm:$0xff]  }
  0xa4   :  { %2462 = vmatpush1.bf16.msra.mxu1 %v3829_v47  ;;  %2306 = vmatpush1.bf16.msra.mxu0 %v3856_v53 }
  0xa5   :  { %2463 = vmatprep.subr.bf16.mxu1 %v3837_v49  ;;  %2307 = vmatprep.subr.bf16.mxu0 %v3857_v54  ;;  %v3919_v54 = vld [vmem:[#allocation7 + $0x2ac] ss:$20 sps:$4 sm:$0xff]  }
  0xa8   :  { %2464 = vmatpush1.bf16.msra.mxu1 %v3835_v51  ;;  %2308 = vmatpush1.bf16.msra.mxu0 %v3862_v56  ;;  %v3914_v51 = vld [vmem:[#allocation7 + $0x288] ss:$20 sps:$4 sm:$0xff]  }
  0xa9   :  { %2465 = vmatprep.subr.bf16.mxu1 %v3843_v52  ;;  %2309 = vmatprep.subr.bf16.mxu0 %v3863_v58  ;;  %v3917_v58 = vld [vmem:[#allocation7 + $0x2a8] ss:$20 sps:$4 sm:$0xff]  }
  0xac   :  { %2466 = vmatpush1.bf16.msra.mxu1 %v3841_v55  ;;  %2310 = vmatpush1.bf16.msra.mxu0 %v3868_v61  ;;  %v3922_v55 = vld [vmem:[#allocation7 + $0x2b4] ss:$20 sps:$4 sm:$0xff]  }
  0xad   :  { %2467 = vmatprep.subr.bf16.mxu1 %v3849_v57  ;;  %2311 = vmatprep.subr.bf16.mxu0 %v3869_v62  ;;  %v3925_v61 = vld [vmem:[#allocation7 + $0x2d4] ss:$20 sps:$4 sm:$0xff]   ;;  %v3928_v62 = vld [vmem:[#allocation7 + $0x2dc] ss:$20 sps:$4 sm:$0xff]  }
  0xb0   :  { %2468 = vmatpush1.bf16.msra.mxu1 %v3847_v59  ;;  %2312 = vmatpush1.bf16.msra.mxu0 %v3874_v1  ;;  %v3920_v59 = vld [vmem:[#allocation7 + $0x2b0] ss:$20 sps:$4 sm:$0xff]  }
  0xb1   :  { %2469 = vmatprep.subr.bf16.mxu1 %v3855_v60  ;;  %2313 = vmatprep.subr.bf16.mxu0 %v3875_v3  ;;  %v3923_v3 = vld [vmem:[#allocation7 + $0x2d0] ss:$20 sps:$4 sm:$0xff]  }
  0xb4   :  { %2470 = vmatpush1.bf16.msra.mxu1 %v3853_v63  ;;  %2314 = vmatpush1.bf16.msra.mxu0 %v3880_v5  ;;  %v3931_v5 = vld [vmem:[#allocation7 + $0x2fc] ss:$20 sps:$4 sm:$0xff]  }
  0xb5   :  { %2471 = vmatprep.subr.bf16.mxu1 %v3861_v2  ;;  %2315 = vmatprep.subr.bf16.mxu0 %v3881_v7  ;;  %v3929_v7 = vld [vmem:[#allocation7 + $0x2f8] ss:$20 sps:$4 sm:$0xff]  }
  0xb8   :  { %2472 = vmatpush1.bf16.msra.mxu1 %v3859_v4  ;;  %2316 = vmatpush1.bf16.msra.mxu0 %v3886_v9  ;;  %v3926_v4 = vld [vmem:[#allocation7 + $0x2d8] ss:$20 sps:$4 sm:$0xff]  }
  0xb9   :  { %2473 = vmatprep.subr.bf16.mxu1 %v3867_v6  ;;  %2317 = vmatprep.subr.bf16.mxu0 %v3887_v11  ;;  %v3934_v6 = vld [vmem:[#allocation7 + $0x304] ss:$20 sps:$4 sm:$0xff]   ;;  %v3935_v11 = vld [vmem:[#allocation7 + $0x320] ss:$20 sps:$4 sm:$0xff]  }
  0xba   :  { %v3937_v9 = vld [vmem:[#allocation7 + $0x324] ss:$20 sps:$4 sm:$0xff]  }
  0xbc   :  { %2474 = vmatpush1.bf16.msra.mxu1 %v3865_v8  ;;  %2318 = vmatpush1.bf16.msra.mxu0 %v3892_v13  ;;  %v3932_v8 = vld [vmem:[#allocation7 + $0x300] ss:$20 sps:$4 sm:$0xff]  }
  0xbd   :  { %2475 = vmatprep.subr.bf16.mxu1 %v3873_v10  ;;  %2319 = vmatprep.subr.bf16.mxu0 %v3893_v15  ;;  %v3940_v10 = vld [vmem:[#allocation7 + $0x32c] ss:$20 sps:$4 sm:$0xff]   ;;  %v3941_v15 = vld [vmem:[#allocation7 + $0x348] ss:$20 sps:$4 sm:$0xff]  }
  0xbe   :  { %v3943_v13 = vld [vmem:[#allocation7 + $0x34c] ss:$20 sps:$4 sm:$0xff]  }
  0xc0   :  { %2476 = vmatpush1.bf16.msra.mxu1 %v3871_v12  ;;  %2320 = vmatpush1.bf16.msra.mxu0 %v3898_v17  ;;  %v3938_v12 = vld [vmem:[#allocation7 + $0x328] ss:$20 sps:$4 sm:$0xff]  }
  0xc1   :  { %2477 = vmatprep.subr.bf16.mxu1 %v3879_v14  ;;  %2321 = vmatprep.subr.bf16.mxu0 %v3899_v24  ;;  %v3946_v14 = vld [vmem:[#allocation7 + $0x354] ss:$20 sps:$4 sm:$0xff]  }
  0xc2   :  { %v3949_v17 = vld [vmem:[#allocation7 + $0x374] ss:$20 sps:$4 sm:$0xff]  }
  0xc4   :  { %2478 = vmatpush1.bf16.msra.mxu1 %v3877_v16  ;;  %2322 = vmatpush1.bf16.msra.mxu0 %v3904_v27  ;;  %v3944_v16 = vld [vmem:[#allocation7 + $0x350] ss:$20 sps:$4 sm:$0xff]  }
  0xc5   :  { %2479 = vmatprep.subr.bf16.mxu1 %v3885_v18  ;;  %2323 = vmatprep.subr.bf16.mxu0 %v3905_v28  ;;  %v3952_v18 = vld [vmem:[#allocation7 + $0x37c] ss:$20 sps:$4 sm:$0xff]   ;;  %v3961_v27 = vld [vmem:[#allocation7 + $0x3c4] ss:$20 sps:$4 sm:$0xff]   ;;  %v3964_v28 = vld [vmem:[#allocation7 + $0x3cc] ss:$20 sps:$4 sm:$0xff]  }
  0xc8   :  { %2480 = vmatpush1.bf16.msra.mxu1 %v3883_v19  ;;  %2324 = vmatpush1.bf16.msra.mxu0 %v3910_v31  ;;  %v3947_v19 = vld [vmem:[#allocation7 + $0x370] ss:$20 sps:$4 sm:$0xff]   ;;  %v3967_v31 = vld [vmem:[#allocation7 + $0x3ec] ss:$20 sps:$4 sm:$0xff]  }
  0xc9   :  { %2481 = vmatprep.subr.bf16.mxu1 %v3891_v20  ;;  %2334 = vmatprep.subr.bf16.mxu0 %v3913_v32  ;;  %v3950_v20 = vld [vmem:[#allocation7 + $0x378] ss:$20 sps:$4 sm:$0xff]   ;;  %v3970_v32 = vld [vmem:[#allocation7 + $0x3f4] ss:$20 sps:$4 sm:$0xff]  }
  0xcc   :  { %2482 = vmatpush1.bf16.msra.mxu1 %v3889_v21 }
  0xcd   :  { %2483 = vmatprep.subr.bf16.mxu1 %v3897_v22  ;;  %v3955_v22 = vld [vmem:[#allocation7 + $0x39c] ss:$20 sps:$4 sm:$0xff]  }
  0xd0   :  { %2484 = vmatpush1.bf16.msra.mxu1 %v3895_v23  ;;  %v3958_v23 = vld [vmem:[#allocation7 + $0x3a4] ss:$20 sps:$4 sm:$0xff]  }
  0xd1   :  { %2485 = vmatprep.subr.bf16.mxu1 %v3903_v25  ;;  %v3953_v25 = vld [vmem:[#allocation7 + $0x398] ss:$20 sps:$4 sm:$0xff]  }
  0xd4   :  { %2486 = vmatpush1.bf16.msra.mxu1 %v3901_v26  ;;  %v3956_v26 = vld [vmem:[#allocation7 + $0x3a0] ss:$20 sps:$4 sm:$0xff]  }
  0xd5   :  { %2487 = vmatprep.subr.bf16.mxu1 %v3909_v29  ;;  %v3959_v29 = vld [vmem:[#allocation7 + $0x3c0] ss:$20 sps:$4 sm:$0xff]  }
  0xd8   :  { %2488 = vmatpush1.bf16.msra.mxu1 %v3907_v30  ;;  %v3962_v30 = vld [vmem:[#allocation7 + $0x3c8] ss:$20 sps:$4 sm:$0xff]  }
  0xd9   :  { %2498 = vmatprep.subr.bf16.mxu1 %v3916_v33  ;;  %v3965_v33 = vld [vmem:[#allocation7 + $0x3e8] ss:$20 sps:$4 sm:$0xff]  }
 0x15c   :  { %v243_v41 = vpop.f32.mrb[0].mxu1 }
 0x15d   :  { %v244_v43 = vadd.f32 %v243_v41, %v141_v39  ;;  %v245_v44 = vpop.f32.mrb[1].mxu1  ;;  %v3973_v39 = vld [vmem:[#allocation7 + $0x414] ss:$20 sps:$4 sm:$0xff]   ;;  %v3971_v41 = vld [vmem:[#allocation7 + $0x410] ss:$20 sps:$4 sm:$0xff]  }
 0x15e   :  { %v246_v45 = vadd.f32 %v245_v44, %v145_v40  ;;  %v3976_v40 = vld [vmem:[#allocation7 + $0x41c] ss:$20 sps:$4 sm:$0xff]  }
 0x15f   :  { %v460_v46 = vmax.f32 %v244_v43, 0.0  ;;  %v3974_v43 = vld [vmem:[#allocation7 + $0x418] ss:$20 sps:$4 sm:$0xff]   ;;  %v3979_v44 = vld [vmem:[#allocation7 + $0x43c] ss:$20 sps:$4 sm:$0xff]  }
 0x160   :  { %v461_v47 = vmax.f32 %v246_v45, 0.0  ;;  %v3982_v45 = vld [vmem:[#allocation7 + $0x444] ss:$20 sps:$4 sm:$0xff]  }
 0x161   :  { %v4582_v53 = vpack.c.bf16 %v460_v46, %v460_v46  ;;  %v3977_v46 = vld [vmem:[#allocation7 + $0x438] ss:$20 sps:$4 sm:$0xff]  }
 0x162   :  { %v4578_v49 = vpack.c.bf16 %v461_v47, %v461_v47  ;;  %v4580_v52 = vpop.f32.mrb[2].mxu1  ;;  %v3980_v47 = vld [vmem:[#allocation7 + $0x440] ss:$20 sps:$4 sm:$0xff]  }
 0x163   :  { %v316_v56 = vpop.f32.mrb[3].mxu1 }
 0x164   :  { %2325 = vmatprep.mubr.bf16.mxu0 %v4578_v49  ;;  %2489 = vmatprep.mubr.bf16.mxu1 %v4578_v49  ;;  %v317_v57 = vadd.f32 %v316_v56, %v153_v48  ;;  %v3985_v48 = vld [vmem:[#allocation7 + $0x464] ss:$20 sps:$4 sm:$0xff]   ;;  %v3991_v56 = vld [vmem:[#allocation7 + $0x48c] ss:$20 sps:$4 sm:$0xff]  }
 0x165   :  { %2326 = vmatmul.mubr.bf16.vlgmr.msra.gmra.mrb[0].mxu0 %v4582_v53  ;;  %2490 = vmatmul.mubr.bf16.vlgmr.msra.gmra.mrb[8].mxu1 %v4582_v53 }
 0x166   :  { %2335 = vmatpush1.bf16.msra.mxu0 %v3911_v50  ;;  %2499 = vmatpush1.bf16.msra.mxu1 %v3914_v51  ;;  %v463_v60 = vmax.f32 %v317_v57, 0.0  ;;  %v3988_v50 = vld [vmem:[#allocation7 + $0x46c] ss:$20 sps:$4 sm:$0xff]   ;;  %v148_v51 = vsub.s32 2, %v4562_v35  ;;  %v3994_v57 = vld [vmem:[#allocation7 + $0x494] ss:$20 sps:$4 sm:$0xff]  }
 0x167   :  { %2336 = vmatprep.subr.bf16.mxu0 %v3919_v54  ;;  %2500 = vmatprep.subr.bf16.mxu1 %v3922_v55  ;;  %v3983_v54 = vld [vmem:[#allocation7 + $0x460] ss:$20 sps:$4 sm:$0xff]   ;;  %v3986_v55 = vld [vmem:[#allocation7 + $0x468] ss:$20 sps:$4 sm:$0xff]  }
 0x168   :  { %v4588_v63 = vpack.c.bf16 %v463_v60, %v463_v60  ;;  %v4590_v1 = vpop.f32.mrb[4].mxu1  ;;  %v3989_v60 = vld [vmem:[#allocation7 + $0x488] ss:$20 sps:$4 sm:$0xff]  }
 0x169   :  { %v4592_v2 = vpop.f32.mrb[5].mxu1 }
 0x16a   :  { %2337 = vmatpush1.bf16.msra.mxu0 %v3917_v58  ;;  %2501 = vmatpush1.bf16.msra.mxu1 %v3920_v59  ;;  %v160_v58 = vsub.s32 5, %v4562_v35  ;;  %v149_v59 = vrot.slane %v4565_v37, %v148_v51 }
 0x16b   :  { %2338 = vmatprep.subr.bf16.mxu0 %v3925_v61  ;;  %2502 = vmatprep.subr.bf16.mxu1 %v3928_v62  ;;  %v3992_v61 = vld [vmem:[#allocation7 + $0x490] ss:$20 sps:$4 sm:$0xff]   ;;  %v3997_v62 = vld [vmem:[#allocation7 + $0x4b4] ss:$20 sps:$4 sm:$0xff]  }
 0x16c   :  { %2366 = vmatprep.mubr.bf16.mxu0 %v4588_v63  ;;  %2530 = vmatprep.mubr.bf16.mxu1 %v4588_v63 }
 0x16e   :  { %2339 = vmatpush1.bf16.msra.mxu0 %v3923_v3  ;;  %2503 = vmatpush1.bf16.msra.mxu1 %v3926_v4  ;;  %v4596_v21 = vpop.f32.mrb[6].mxu1  ;;  %v4000_v3 = vld [vmem:[#allocation7 + $0x4bc] ss:$20 sps:$4 sm:$0xff]   ;;  %v161_v4 = vrot.slane %v4565_v37, %v160_v58  ;;  %v4060_v58 = vld [vmem:[#allocation7 + $0x64c] ss:$20 sps:$4 sm:$0xff]  }
 0x16f   :  { %2340 = vmatprep.subr.bf16.mxu0 %v3931_v5  ;;  %2504 = vmatprep.subr.bf16.mxu1 %v3934_v6  ;;  %v3714_v24 = vpop.f32.mrb[7].mxu1  ;;  %v315_v5 = vadd.f32 %v4580_v52, %v149_v59  ;;  %v3995_v6 = vld [vmem:[#allocation7 + $0x4b0] ss:$20 sps:$4 sm:$0xff]   ;;  %v4055_v59 = vld [vmem:[#allocation7 + $0x640] ss:$20 sps:$4 sm:$0xff]  }
 0x170   :  { %v4021_v24 = vld [vmem:[#allocation7 + $0x554] ss:$20 sps:$4 sm:$0xff]  }
 0x172   :  { %2341 = vmatpush1.bf16.msra.mxu0 %v3929_v7  ;;  %2505 = vmatpush1.bf16.msra.mxu1 %v3932_v8  ;;  %v3998_v7 = vld [vmem:[#allocation7 + $0x4b8] ss:$20 sps:$4 sm:$0xff]   ;;  %v4003_v8 = vld [vmem:[#allocation7 + $0x4dc] ss:$20 sps:$4 sm:$0xff]  }
 0x173   :  { %2342 = vmatprep.subr.bf16.mxu0 %v3937_v9  ;;  %2506 = vmatprep.subr.bf16.mxu1 %v3940_v10  ;;  %v4006_v9 = vld [vmem:[#allocation7 + $0x4e4] ss:$20 sps:$4 sm:$0xff]   ;;  %v388_v10 = vadd.f32 %v4592_v2, %v161_v4  ;;  %v4018_v2 = vld [vmem:[#allocation7 + $0x534] ss:$20 sps:$4 sm:$0xff]  }
 0x174   :  { %v4064_v4 = vld [vmem:[#allocation7 + $0x670] ss:$20 sps:$4 sm:$0xff]  }
 0x175   :  { %v465_v52 = vmax.f32 %v388_v10, 0.0  ;;  %v4078_v10 = vld [vmem:[#allocation7 + $0x6c4] ss:$20 sps:$4 sm:$0xff]  }
 0x176   :  { %2343 = vmatpush1.bf16.msra.mxu0 %v3935_v11  ;;  %2507 = vmatpush1.bf16.msra.mxu1 %v3938_v12  ;;  %v462_v11 = vmax.f32 %v315_v5, 0.0  ;;  %v4001_v12 = vld [vmem:[#allocation7 + $0x4d8] ss:$20 sps:$4 sm:$0xff]   ;;  %v4069_v5 = vld [vmem:[#allocation7 + $0x694] ss:$20 sps:$4 sm:$0xff]  }
 0x177   :  { %2344 = vmatprep.subr.bf16.mxu0 %v3943_v13  ;;  %2508 = vmatprep.subr.bf16.mxu1 %v3946_v14  ;;  %v4004_v13 = vld [vmem:[#allocation7 + $0x4e0] ss:$20 sps:$4 sm:$0xff]   ;;  %v4009_v14 = vld [vmem:[#allocation7 + $0x504] ss:$20 sps:$4 sm:$0xff]  }
 0x17a   :  { %2345 = vmatpush1.bf16.msra.mxu0 %v3941_v15  ;;  %2509 = vmatpush1.bf16.msra.mxu1 %v3944_v16  ;;  %v4012_v15 = vld [vmem:[#allocation7 + $0x50c] ss:$20 sps:$4 sm:$0xff]   ;;  %v4606_v16 = vpack.c.bf16 %v462_v11, %v462_v11 }
 0x17b   :  { %2346 = vmatprep.subr.bf16.mxu0 %v3949_v17  ;;  %2510 = vmatprep.subr.bf16.mxu1 %v3952_v18  ;;  %v4007_v17 = vld [vmem:[#allocation7 + $0x500] ss:$20 sps:$4 sm:$0xff]   ;;  %v4010_v18 = vld [vmem:[#allocation7 + $0x508] ss:$20 sps:$4 sm:$0xff]   ;;  %v4073_v11 = vld [vmem:[#allocation7 + $0x6b8] ss:$20 sps:$4 sm:$0xff]  }
 0x17e   :  { %2347 = vmatpush1.bf16.msra.mxu0 %v3947_v19  ;;  %2511 = vmatpush1.bf16.msra.mxu1 %v3950_v20  ;;  %v4015_v19 = vld [vmem:[#allocation7 + $0x52c] ss:$20 sps:$4 sm:$0xff]   ;;  %v4608_v20 = vpack.c.bf16 %v465_v52, %v465_v52 }
 0x17f   :  { %2348 = vmatprep.subr.bf16.mxu0 %v3955_v22  ;;  %2512 = vmatprep.subr.bf16.mxu1 %v3958_v23  ;;  %v4013_v22 = vld [vmem:[#allocation7 + $0x528] ss:$20 sps:$4 sm:$0xff]   ;;  %v4016_v23 = vld [vmem:[#allocation7 + $0x530] ss:$20 sps:$4 sm:$0xff]   ;;  %v4079_v52 = vld [vmem:[#allocation7 + $0x6e0] ss:$20 sps:$4 sm:$0xff]  }
 0x182   :  { %2349 = vmatpush1.bf16.msra.mxu0 %v3953_v25  ;;  %2513 = vmatpush1.bf16.msra.mxu1 %v3956_v26  ;;  %v4024_v25 = vld [vmem:[#allocation7 + $0x55c] ss:$20 sps:$4 sm:$0xff]  }
 0x183   :  { %2350 = vmatprep.subr.bf16.mxu0 %v3961_v27  ;;  %2514 = vmatprep.subr.bf16.mxu1 %v3964_v28  ;;  %v4019_v26 = vld [vmem:[#allocation7 + $0x550] ss:$20 sps:$4 sm:$0xff]   ;;  %v4022_v27 = vld [vmem:[#allocation7 + $0x558] ss:$20 sps:$4 sm:$0xff]  }
 0x184   :  { %v4027_v28 = vld [vmem:[#allocation7 + $0x57c] ss:$20 sps:$4 sm:$0xff]  }
 0x186   :  { %2351 = vmatpush1.bf16.msra.mxu0 %v3959_v29  ;;  %2515 = vmatpush1.bf16.msra.mxu1 %v3962_v30  ;;  %v4030_v29 = vld [vmem:[#allocation7 + $0x584] ss:$20 sps:$4 sm:$0xff]  }
 0x187   :  { %2352 = vmatprep.subr.bf16.mxu0 %v3967_v31  ;;  %2516 = vmatprep.subr.bf16.mxu1 %v3970_v32  ;;  %v4025_v30 = vld [vmem:[#allocation7 + $0x578] ss:$20 sps:$4 sm:$0xff]   ;;  %v4028_v31 = vld [vmem:[#allocation7 + $0x580] ss:$20 sps:$4 sm:$0xff]  }
 0x188   :  { %v4033_v32 = vld [vmem:[#allocation7 + $0x5a4] ss:$20 sps:$4 sm:$0xff]  }
 0x18a   :  { %2353 = vmatpush1.bf16.msra.mxu0 %v3965_v33  ;;  %2517 = vmatpush1.bf16.msra.mxu1 %v3968_v34  ;;  %v4036_v33 = vld [vmem:[#allocation7 + $0x5ac] ss:$20 sps:$4 sm:$0xff]  }
 0x18b   :  { %2354 = vmatprep.subr.bf16.mxu0 %v3973_v39  ;;  %2518 = vmatprep.subr.bf16.mxu1 %v3976_v40  ;;  %v4031_v34 = vld [vmem:[#allocation7 + $0x5a0] ss:$20 sps:$4 sm:$0xff]   ;;  %v4034_v39 = vld [vmem:[#allocation7 + $0x5a8] ss:$20 sps:$4 sm:$0xff]  }
 0x18c   :  { %v4039_v40 = vld [vmem:[#allocation7 + $0x5cc] ss:$20 sps:$4 sm:$0xff]  }
 0x18e   :  { %2355 = vmatpush1.bf16.msra.mxu0 %v3971_v41  ;;  %2519 = vmatpush1.bf16.msra.mxu1 %v3974_v43  ;;  %v4042_v41 = vld [vmem:[#allocation7 + $0x5d4] ss:$20 sps:$4 sm:$0xff]  }
 0x18f   :  { %2356 = vmatprep.subr.bf16.mxu0 %v3979_v44  ;;  %2520 = vmatprep.subr.bf16.mxu1 %v3982_v45  ;;  %v4037_v43 = vld [vmem:[#allocation7 + $0x5c8] ss:$20 sps:$4 sm:$0xff]   ;;  %v4040_v44 = vld [vmem:[#allocation7 + $0x5d0] ss:$20 sps:$4 sm:$0xff]  }
 0x190   :  { %v4045_v45 = vld [vmem:[#allocation7 + $0x5f4] ss:$20 sps:$4 sm:$0xff]  }
 0x192   :  { %2357 = vmatpush1.bf16.msra.mxu0 %v3977_v46  ;;  %2521 = vmatpush1.bf16.msra.mxu1 %v3980_v47  ;;  %v4048_v46 = vld [vmem:[#allocation7 + $0x5fc] ss:$20 sps:$4 sm:$0xff]  }
 0x193   :  { %2358 = vmatprep.subr.bf16.mxu0 %v3985_v48  ;;  %2522 = vmatprep.subr.bf16.mxu1 %v3988_v50  ;;  %v4043_v47 = vld [vmem:[#allocation7 + $0x5f0] ss:$20 sps:$4 sm:$0xff]   ;;  %v4046_v48 = vld [vmem:[#allocation7 + $0x5f8] ss:$20 sps:$4 sm:$0xff]  }
 0x194   :  { %v4051_v50 = vld [vmem:[#allocation7 + $0x61c] ss:$20 sps:$4 sm:$0xff]  }
 0x196   :  { %2359 = vmatpush1.bf16.msra.mxu0 %v3983_v54  ;;  %2523 = vmatpush1.bf16.msra.mxu1 %v3986_v55  ;;  %v4054_v54 = vld [vmem:[#allocation7 + $0x624] ss:$20 sps:$4 sm:$0xff]  }
 0x197   :  { %2360 = vmatprep.subr.bf16.mxu0 %v3991_v56  ;;  %2524 = vmatprep.subr.bf16.mxu1 %v3994_v57  ;;  %v4049_v55 = vld [vmem:[#allocation7 + $0x618] ss:$20 sps:$4 sm:$0xff]   ;;  %v4052_v56 = vld [vmem:[#allocation7 + $0x620] ss:$20 sps:$4 sm:$0xff]  }
 0x198   :  { %v4057_v57 = vld [vmem:[#allocation7 + $0x644] ss:$20 sps:$4 sm:$0xff]  }
 0x19a   :  { %2361 = vmatpush1.bf16.msra.mxu0 %v3989_v60  ;;  %2525 = vmatpush1.bf16.msra.mxu1 %v3992_v61  ;;  %v4058_v60 = vld [vmem:[#allocation7 + $0x648] ss:$20 sps:$4 sm:$0xff]   ;;  %v4063_v61 = vld [vmem:[#allocation7 + $0x66c] ss:$20 sps:$4 sm:$0xff]  }
 0x19b   :  { %2362 = vmatprep.subr.bf16.mxu0 %v3997_v62  ;;  %2526 = vmatprep.subr.bf16.mxu1 %v4000_v3  ;;  %v4066_v62 = vld [vmem:[#allocation7 + $0x674] ss:$20 sps:$4 sm:$0xff]  }
 0x19c   :  { %v4061_v3 = vld [vmem:[#allocation7 + $0x668] ss:$20 sps:$4 sm:$0xff]  }
 0x19e   :  { %2363 = vmatpush1.bf16.msra.mxu0 %v3995_v6  ;;  %2527 = vmatpush1.bf16.msra.mxu1 %v3998_v7  ;;  %v4072_v6 = vld [vmem:[#allocation7 + $0x69c] ss:$20 sps:$4 sm:$0xff]  }
 0x19f   :  { %2364 = vmatprep.subr.bf16.mxu0 %v4003_v8  ;;  %2528 = vmatprep.subr.bf16.mxu1 %v4006_v9  ;;  %v4067_v7 = vld [vmem:[#allocation7 + $0x690] ss:$20 sps:$4 sm:$0xff]   ;;  %v4070_v8 = vld [vmem:[#allocation7 + $0x698] ss:$20 sps:$4 sm:$0xff]  }
 0x1a0   :  { %v4075_v9 = vld [vmem:[#allocation7 + $0x6bc] ss:$20 sps:$4 sm:$0xff]  }
 0x1a2   :  { %2365 = vmatpush1.bf16.msra.mxu0 %v4001_v12  ;;  %2529 = vmatpush1.bf16.msra.mxu1 %v4004_v13  ;;  %v4076_v12 = vld [vmem:[#allocation7 + $0x6c0] ss:$20 sps:$4 sm:$0xff]   ;;  %v4081_v13 = vld [vmem:[#allocation7 + $0x6e4] ss:$20 sps:$4 sm:$0xff]  }
 0x1a3   :  { %2375 = vmatprep.subr.bf16.mxu0 %v4009_v14  ;;  %2539 = vmatprep.subr.bf16.mxu1 %v4012_v15  ;;  %v4084_v14 = vld [vmem:[#allocation7 + $0x6ec] ss:$20 sps:$4 sm:$0xff]   ;;  %v156_v15 = vsub.s32 4, %v4562_v35 }
 0x1a5   :  { %2367 = vmatmul.mubr.bf16.vlgmr.msra.gmra.mrb[0].mxu0 %v4606_v16  ;;  %2531 = vmatmul.mubr.bf16.vlgmr.msra.gmra.mrb[8].mxu1 %v4606_v16 }
 0x1a6   :  { %2376 = vmatpush1.bf16.msra.mxu0 %v4007_v17  ;;  %2540 = vmatpush1.bf16.msra.mxu1 %v4010_v18  ;;  %v4082_v17 = vld [vmem:[#allocation7 + $0x6e8] ss:$20 sps:$4 sm:$0xff]   ;;  %v4087_v18 = vld [vmem:[#allocation7 + $0x70c] ss:$20 sps:$4 sm:$0xff]  }
 0x1a7   :  { %2377 = vmatprep.subr.bf16.mxu0 %v4015_v19  ;;  %2541 = vmatprep.subr.bf16.mxu1 %v4018_v2  ;;  %v4090_v19 = vld [vmem:[#allocation7 + $0x714] ss:$20 sps:$4 sm:$0xff]   ;;  %v157_v2 = vrot.slane %v4565_v37, %v156_v15 }
 0x1a8   :  { %2407 = vmatprep.mubr.bf16.mxu0 %v4608_v20  ;;  %2571 = vmatprep.mubr.bf16.mxu1 %v4608_v20 }
 0x1aa   :  { %2378 = vmatpush1.bf16.msra.mxu0 %v4013_v22  ;;  %2542 = vmatpush1.bf16.msra.mxu1 %v4016_v23  ;;  %v4085_v22 = vld [vmem:[#allocation7 + $0x708] ss:$20 sps:$4 sm:$0xff]   ;;  %v4088_v23 = vld [vmem:[#allocation7 + $0x710] ss:$20 sps:$4 sm:$0xff]  }
 0x1ab   :  { %2379 = vmatprep.subr.bf16.mxu0 %v4021_v24  ;;  %2543 = vmatprep.subr.bf16.mxu1 %v4024_v25  ;;  %v4093_v24 = vld [vmem:[#allocation7 + $0x734] ss:$20 sps:$4 sm:$0xff]   ;;  %v4096_v25 = vld [vmem:[#allocation7 + $0x73c] ss:$20 sps:$4 sm:$0xff]  }
 0x1ae   :  { %2380 = vmatpush1.bf16.msra.mxu0 %v4019_v26  ;;  %2544 = vmatpush1.bf16.msra.mxu1 %v4022_v27  ;;  %v386_v26 = vadd.f32 %v4590_v1, %v157_v2  ;;  %v4091_v27 = vld [vmem:[#allocation7 + $0x730] ss:$20 sps:$4 sm:$0xff]   ;;  %v4103_v1 = vld [vmem:[#allocation7 + $0x780] ss:$20 sps:$4 sm:$0xff]  }
 0x1af   :  { %2381 = vmatprep.subr.bf16.mxu0 %v4027_v28  ;;  %2545 = vmatprep.subr.bf16.mxu1 %v4030_v29  ;;  %v4094_v28 = vld [vmem:[#allocation7 + $0x738] ss:$20 sps:$4 sm:$0xff]   ;;  %v4099_v29 = vld [vmem:[#allocation7 + $0x75c] ss:$20 sps:$4 sm:$0xff]  }
 0x1b0   :  { %v4151_v2 = vld [vmem:[#allocation7 + $0x150] ss:$20 sps:$4 sm:$0xff]  }
 0x1b2   :  { %2382 = vmatpush1.bf16.msra.mxu0 %v4025_v30  ;;  %2546 = vmatpush1.bf16.msra.mxu1 %v4028_v31  ;;  %v4102_v30 = vld [vmem:[#allocation7 + $0x764] ss:$20 sps:$4 sm:$0xff]   ;;  %v464_v31 = vmax.f32 %v386_v26, 0.0 }
 0x1b3   :  { %2383 = vmatprep.subr.bf16.mxu0 %v4033_v32  ;;  %2547 = vmatprep.subr.bf16.mxu1 %v4036_v33  ;;  %v4097_v32 = vld [vmem:[#allocation7 + $0x758] ss:$20 sps:$4 sm:$0xff]   ;;  %v4100_v33 = vld [vmem:[#allocation7 + $0x760] ss:$20 sps:$4 sm:$0xff]  }
 0x1b4   :  { %v4156_v26 = vld [vmem:[#allocation7 + $0x3f8] ss:$20 sps:$4 sm:$0xff]  }
 0x1b6   :  { %2384 = vmatpush1.bf16.msra.mxu0 %v4031_v34  ;;  %2548 = vmatpush1.bf16.msra.mxu1 %v4034_v39  ;;  %v4105_v34 = vld [vmem:[#allocation7 + $0x784] ss:$20 sps:$4 sm:$0xff]   ;;  %v4108_v39 = vld [vmem:[#allocation7 + $0x78c] ss:$20 sps:$4 sm:$0xff]  }
 0x1b7   :  { %2385 = vmatprep.subr.bf16.mxu0 %v4039_v40  ;;  %2549 = vmatprep.subr.bf16.mxu1 %v4042_v41  ;;  %v4619_v40 = vpack.c.bf16 %v464_v31, %v464_v31  ;;  %v4106_v41 = vld [vmem:[#allocation7 + $0x788] ss:$20 sps:$4 sm:$0xff]   ;;  %v4161_v31 = vld [vmem:[#allocation7 + $0x60] ss:$20 sps:$4 sm:$0xff]  }
 0x1ba   :  { %2386 = vmatpush1.bf16.msra.mxu0 %v4037_v43  ;;  %2550 = vmatpush1.bf16.msra.mxu1 %v4040_v44  ;;  %v4111_v43 = vld [vmem:[#allocation7 + $0x7ac] ss:$20 sps:$4 sm:$0xff]   ;;  %v4114_v44 = vld [vmem:[#allocation7 + $0x7b4] ss:$20 sps:$4 sm:$0xff]  }
 0x1bb   :  { %2387 = vmatprep.subr.bf16.mxu0 %v4045_v45  ;;  %2551 = vmatprep.subr.bf16.mxu1 %v4048_v46  ;;  %v4109_v45 = vld [vmem:[#allocation7 + $0x7a8] ss:$20 sps:$4 sm:$0xff]   ;;  %v4112_v46 = vld [vmem:[#allocation7 + $0x7b0] ss:$20 sps:$4 sm:$0xff]  }
 0x1be   :  { %2388 = vmatpush1.bf16.msra.mxu0 %v4043_v47  ;;  %2552 = vmatpush1.bf16.msra.mxu1 %v4046_v48  ;;  %v4117_v47 = vld [vmem:[#allocation7 + $0x7d4] ss:$20 sps:$4 sm:$0xff]   ;;  %v4120_v48 = vld [vmem:[#allocation7 + $0x7dc] ss:$20 sps:$4 sm:$0xff]  }
 0x1bf   :  { %2389 = vmatprep.subr.bf16.mxu0 %v4051_v50  ;;  %2553 = vmatprep.subr.bf16.mxu1 %v4054_v54  ;;  %v4427_v50 = vmov 0   ;;  %v4115_v54 = vld [vmem:[#allocation7 + $0x7d0] ss:$20 sps:$4 sm:$0xff]  }
 0x1c2   :  { %2390 = vmatpush1.bf16.msra.mxu0 %v4049_v55  ;;  %2554 = vmatpush1.bf16.msra.mxu1 %v4052_v56  ;;  %v4118_v55 = vld [vmem:[#allocation7 + $0x7d8] ss:$20 sps:$4 sm:$0xff]   ;;  %v4123_v56 = vld [vmem:[#allocation7 + $0x7fc] ss:$20 sps:$4 sm:$0xff]  }
 0x1c3   :  { %2391 = vmatprep.subr.bf16.mxu0 %v4057_v57  ;;  %2555 = vmatprep.subr.bf16.mxu1 %v4060_v58  ;;  %v4126_v57 = vld [vmem:[#allocation7 + $0x804] ss:$20 sps:$4 sm:$0xff]  }
 0x1c4   :  { %v4121_v58 = vld [vmem:[#allocation7 + $0x7f8] ss:$20 sps:$4 sm:$0xff]  }
 0x1c6   :  { %2392 = vmatpush1.bf16.msra.mxu0 %v4055_v59  ;;  %2556 = vmatpush1.bf16.msra.mxu1 %v4058_v60  ;;  %v4124_v59 = vld [vmem:[#allocation7 + $0x800] ss:$20 sps:$4 sm:$0xff]   ;;  %v4129_v60 = vld [vmem:[#allocation7 + $0x824] ss:$20 sps:$4 sm:$0xff]  }
 0x1c7   :  { %2393 = vmatprep.subr.bf16.mxu0 %v4063_v61  ;;  %2557 = vmatprep.subr.bf16.mxu1 %v4066_v62  ;;  %v4132_v61 = vld [vmem:[#allocation7 + $0x82c] ss:$20 sps:$4 sm:$0xff]   ;;  %v164_v62 = vsub.s32 6, %v4562_v35 }
 0x1ca   :  { %2394 = vmatpush1.bf16.msra.mxu0 %v4061_v3  ;;  %2558 = vmatpush1.bf16.msra.mxu1 %v4064_v4  ;;  %v4127_v3 = vld [vmem:[#allocation7 + $0x820] ss:$20 sps:$4 sm:$0xff]   ;;  %v4130_v4 = vld [vmem:[#allocation7 + $0x828] ss:$20 sps:$4 sm:$0xff]  }
 0x1cb   :  { %2395 = vmatprep.subr.bf16.mxu0 %v4069_v5  ;;  %2559 = vmatprep.subr.bf16.mxu1 %v4072_v6  ;;  %v4135_v5 = vld [vmem:[#allocation7 + $0x84c] ss:$20 sps:$4 sm:$0xff]   ;;  %v4138_v6 = vld [vmem:[#allocation7 + $0x854] ss:$20 sps:$4 sm:$0xff]  }
 0x1ce   :  { %2396 = vmatpush1.bf16.msra.mxu0 %v4067_v7  ;;  %2560 = vmatpush1.bf16.msra.mxu1 %v4070_v8  ;;  %v165_v7 = vrot.slane %v4565_v37, %v164_v62  ;;  %v4133_v8 = vld [vmem:[#allocation7 + $0x848] ss:$20 sps:$4 sm:$0xff]   ;;  %v4145_v37 = vld [vmem:[#allocation7 + $0x898] ss:$20 sps:$4 sm:$0xff]   ;;  %v4185_v62 = vld [vmem:[#allocation7 + $0x790] ss:$20 sps:$4 sm:$0xff]  }
 0x1cf   :  { %2397 = vmatprep.subr.bf16.mxu0 %v4075_v9  ;;  %2561 = vmatprep.subr.bf16.mxu1 %v4078_v10  ;;  %v4136_v9 = vld [vmem:[#allocation7 + $0x850] ss:$20 sps:$4 sm:$0xff]   ;;  %v4141_v10 = vld [vmem:[#allocation7 + $0x874] ss:$20 sps:$4 sm:$0xff]  }
 0x1d2   :  { %2398 = vmatpush1.bf16.msra.mxu0 %v4073_v11  ;;  %2562 = vmatpush1.bf16.msra.mxu1 %v4076_v12  ;;  %v4144_v11 = vld [vmem:[#allocation7 + $0x87c] ss:$20 sps:$4 sm:$0xff]   ;;  %v457_v12 = vadd.f32 %v4596_v21, %v165_v7  ;;  %v4190_v7 = vld [vmem:[#allocation7 + $0x560] ss:$20 sps:$4 sm:$0xff]  }
 0x1d3   :  { %2399 = vmatprep.subr.bf16.mxu0 %v4081_v13  ;;  %2563 = vmatprep.subr.bf16.mxu1 %v4084_v14  ;;  %v4139_v13 = vld [vmem:[#allocation7 + $0x870] ss:$20 sps:$4 sm:$0xff]   ;;  %v4142_v14 = vld [vmem:[#allocation7 + $0x878] ss:$20 sps:$4 sm:$0xff]  }
 0x1d4   :  { %v4153_v21 = vld [vmem:[#allocation7 + $0x10] ss:$20 sps:$4 sm:$0xff]  }
 0x1d6   :  { %2400 = vmatpush1.bf16.msra.mxu0 %v4079_v52  ;;  %2564 = vmatpush1.bf16.msra.mxu1 %v4082_v17  ;;  %v4147_v52 = vld [vmem:[#allocation7 + $0x89c] ss:$20 sps:$4 sm:$0xff]   ;;  %v4150_v17 = vld [vmem:[#allocation7 + $0x8a4] ss:$20 sps:$4 sm:$0xff]  }
 0x1d7   :  { %2401 = vmatprep.subr.bf16.mxu0 %v4087_v18  ;;  %2565 = vmatprep.subr.bf16.mxu1 %v4090_v19  ;;  %v466_v18 = vmax.f32 %v457_v12, 0.0  ;;  %v4148_v19 = vld [vmem:[#allocation7 + $0x8a0] ss:$20 sps:$4 sm:$0xff]   ;;  %v4198_v12 = vld [vmem:[#allocation7 + $0x718] ss:$20 sps:$4 sm:$0xff]  }
 0x1da   :  { %2402 = vmatpush1.bf16.msra.mxu0 %v4085_v22  ;;  %2566 = vmatpush1.bf16.msra.mxu1 %v4088_v23  ;;  %v4152_v22 = vld [vmem:[#allocation7 + $0x3d0] ss:$20 sps:$4 sm:$0xff]   ;;  %v4626_v23 = vpack.c.bf16 %v466_v18, %v466_v18  ;;  %v4203_v18 = vld [vmem:[#allocation7 + $0x880] ss:$20 sps:$4 sm:$0xff]  }
 0x1db   :  { %2403 = vmatprep.subr.bf16.mxu0 %v4093_v24  ;;  %2567 = vmatprep.subr.bf16.mxu1 %v4096_v25  ;;  %v4154_v24 = vld [vmem:[#allocation7 + $0x290] ss:$20 sps:$4 sm:$0xff]   ;;  %v4155_v25 = vld [vmem:[#allocation7 + $0x178] ss:$20 sps:$4 sm:$0xff]  }
 0x1de   :  { %2404 = vmatpush1.bf16.msra.mxu0 %v4091_v27  ;;  %2568 = vmatpush1.bf16.msra.mxu1 %v4094_v28  ;;  %v4157_v27 = vld [vmem:[#allocation7 + $0x38] ss:$20 sps:$4 sm:$0xff]  }
 0x1df   :  { %2405 = vmatprep.subr.bf16.mxu0 %v4099_v29  ;;  %2569 = vmatprep.subr.bf16.mxu1 %v4102_v30  ;;  %v4158_v28 = vld [vmem:[#allocation7 + $0x2b8] ss:$20 sps:$4 sm:$0xff]   ;;  %v4159_v29 = vld [vmem:[#allocation7 + $0x1a0] ss:$20 sps:$4 sm:$0xff]  }
 0x1e0   :  { %v4160_v30 = vld [vmem:[#allocation7 + $0x420] ss:$20 sps:$4 sm:$0xff]  }
 0x1e2   :  { %2406 = vmatpush1.bf16.msra.mxu0 %v4097_v32  ;;  %2570 = vmatpush1.bf16.msra.mxu1 %v4100_v33  ;;  %v4162_v32 = vld [vmem:[#allocation7 + $0x2e0] ss:$20 sps:$4 sm:$0xff]   ;;  %v4163_v33 = vld [vmem:[#allocation7 + $0x1c8] ss:$20 sps:$4 sm:$0xff]  }
 0x1e3   :  { %2416 = vmatprep.subr.bf16.mxu0 %v4105_v34  ;;  %2580 = vmatprep.subr.bf16.mxu1 %v4108_v39  ;;  %v4164_v34 = vld [vmem:[#allocation7 + $0x448] ss:$20 sps:$4 sm:$0xff]  }
 0x1e4   :  { %v4165_v39 = vld [vmem:[#allocation7 + $0x88] ss:$20 sps:$4 sm:$0xff]  }
 0x1e5   :  { %2408 = vmatmul.mubr.bf16.vlgmr.msra.gmra.mrb[0].mxu0 %v4619_v40  ;;  %2572 = vmatmul.mubr.bf16.vlgmr.msra.gmra.mrb[8].mxu1 %v4619_v40 }
 0x1e6   :  { %2417 = vmatpush1.bf16.msra.mxu0 %v4103_v1  ;;  %2581 = vmatpush1.bf16.msra.mxu1 %v4106_v41  ;;  %v4167_v1 = vld [vmem:[#allocation7 + $0x1f0] ss:$20 sps:$4 sm:$0xff]  }
 0x1e7   :  { %2418 = vmatprep.subr.bf16.mxu0 %v4111_v43  ;;  %2582 = vmatprep.subr.bf16.mxu1 %v4114_v44  ;;  %v4169_v41 = vld [vmem:[#allocation7 + $0xb0] ss:$20 sps:$4 sm:$0xff]   ;;  %v4171_v44 = vld [vmem:[#allocation7 + $0x218] ss:$20 sps:$4 sm:$0xff]  }
 0x1e8   :  { %2448 = vmatprep.mubr.bf16.mxu0 %v4427_v50  ;;  %2612 = vmatprep.mubr.bf16.mxu1 %v4427_v50  ;;  %v4170_v43 = vld [vmem:[#allocation7 + $0x330] ss:$20 sps:$4 sm:$0xff]   ;;  %v4176_v50 = vld [vmem:[#allocation7 + $0x4c0] ss:$20 sps:$4 sm:$0xff]  }
 0x1ea   :  { %2419 = vmatpush1.bf16.msra.mxu0 %v4109_v45  ;;  %2583 = vmatpush1.bf16.msra.mxu1 %v4112_v46  ;;  %v4172_v45 = vld [vmem:[#allocation7 + $0x498] ss:$20 sps:$4 sm:$0xff]  }
 0x1eb   :  { %2420 = vmatprep.subr.bf16.mxu0 %v4117_v47  ;;  %2584 = vmatprep.subr.bf16.mxu1 %v4120_v48  ;;  %v4173_v46 = vld [vmem:[#allocation7 + $0xd8] ss:$20 sps:$4 sm:$0xff]   ;;  %v4175_v48 = vld [vmem:[#allocation7 + $0x240] ss:$20 sps:$4 sm:$0xff]  }
 0x1ec   :  { %v4174_v47 = vld [vmem:[#allocation7 + $0x358] ss:$20 sps:$4 sm:$0xff]  }
 0x1ee   :  { %2421 = vmatpush1.bf16.msra.mxu0 %v4115_v54  ;;  %2585 = vmatpush1.bf16.msra.mxu1 %v4118_v55  ;;  %v4177_v54 = vld [vmem:[#allocation7 + $0x100] ss:$20 sps:$4 sm:$0xff]  }
 0x1ef   :  { %2422 = vmatprep.subr.bf16.mxu0 %v4123_v56  ;;  %2586 = vmatprep.subr.bf16.mxu1 %v4126_v57  ;;  %v4178_v55 = vld [vmem:[#allocation7 + $0x380] ss:$20 sps:$4 sm:$0xff]   ;;  %v4179_v56 = vld [vmem:[#allocation7 + $0x268] ss:$20 sps:$4 sm:$0xff]  }
 0x1f0   :  { %v4180_v57 = vld [vmem:[#allocation7 + $0x4e8] ss:$20 sps:$4 sm:$0xff]  }
 0x1f2   :  { %2423 = vmatpush1.bf16.msra.mxu0 %v4121_v58  ;;  %2587 = vmatpush1.bf16.msra.mxu1 %v4124_v59  ;;  %v4181_v58 = vld [vmem:[#allocation7 + $0x128] ss:$20 sps:$4 sm:$0xff]  }
 0x1f3   :  { %2424 = vmatprep.subr.bf16.mxu0 %v4129_v60  ;;  %2588 = vmatprep.subr.bf16.mxu1 %v4132_v61  ;;  %v4182_v59 = vld [vmem:[#allocation7 + $0x3a8] ss:$20 sps:$4 sm:$0xff]   ;;  %v4183_v60 = vld [vmem:[#allocation7 + $0x650] ss:$20 sps:$4 sm:$0xff]  }
 0x1f4   :  { %v4184_v61 = vld [vmem:[#allocation7 + $0x510] ss:$20 sps:$4 sm:$0xff]  }
 0x1f6   :  { %2425 = vmatpush1.bf16.msra.mxu0 %v4127_v3  ;;  %2589 = vmatpush1.bf16.msra.mxu1 %v4130_v4  ;;  %v4186_v3 = vld [vmem:[#allocation7 + $0x678] ss:$20 sps:$4 sm:$0xff]  }
 0x1f7   :  { %2426 = vmatprep.subr.bf16.mxu0 %v4135_v5  ;;  %2590 = vmatprep.subr.bf16.mxu1 %v4138_v6  ;;  %v4187_v4 = vld [vmem:[#allocation7 + $0x538] ss:$20 sps:$4 sm:$0xff]   ;;  %v4189_v6 = vld [vmem:[#allocation7 + $0x6a0] ss:$20 sps:$4 sm:$0xff]  }
 0x1f8   :  { %v4188_v5 = vld [vmem:[#allocation7 + $0x7b8] ss:$20 sps:$4 sm:$0xff]  }
 0x1fa   :  { %2427 = vmatpush1.bf16.msra.mxu0 %v4133_v8  ;;  %2591 = vmatpush1.bf16.msra.mxu1 %v4136_v9  ;;  %v4192_v8 = vld [vmem:[#allocation7 + $0x6c8] ss:$20 sps:$4 sm:$0xff]   ;;  %v4195_v9 = vld [vmem:[#allocation7 + $0x6f0] ss:$20 sps:$4 sm:$0xff]  }
 0x1fb   :  { %2428 = vmatprep.subr.bf16.mxu0 %v4141_v10  ;;  %2592 = vmatprep.subr.bf16.mxu1 %v4144_v11  ;;  %v4196_v10 = vld [vmem:[#allocation7 + $0x5b0] ss:$20 sps:$4 sm:$0xff]  }
 0x1fc   :  { %v4197_v11 = vld [vmem:[#allocation7 + $0x830] ss:$20 sps:$4 sm:$0xff]  }
 0x1fe   :  { %2429 = vmatpush1.bf16.msra.mxu0 %v4139_v13  ;;  %2593 = vmatpush1.bf16.msra.mxu1 %v4142_v14  ;;  %v4199_v13 = vld [vmem:[#allocation7 + $0x5d8] ss:$20 sps:$4 sm:$0xff]  }
 0x1ff   :  { %2430 = vmatprep.subr.bf16.mxu0 %v4147_v52  ;;  %2594 = vmatprep.subr.bf16.mxu1 %v4150_v17  ;;  %v4200_v14 = vld [vmem:[#allocation7 + $0x858] ss:$20 sps:$4 sm:$0xff]   ;;  %v4201_v52 = vld [vmem:[#allocation7 + $0x740] ss:$20 sps:$4 sm:$0xff]  }
 0x200   :  { %v4202_v17 = vld [vmem:[#allocation7 + $0x600] ss:$20 sps:$4 sm:$0xff]  }
 0x202   :  { %2431 = vmatpush1.bf16.msra.mxu0 %v4145_v37  ;;  %2595 = vmatpush1.bf16.msra.mxu1 %v4148_v19  ;;  %v4204_v37 = vld [vmem:[#allocation7 + $0x768] ss:$20 sps:$4 sm:$0xff]  }
 0x203   :  { %3578 = vmatprep.subr.bf16.mxu0 %v4151_v2  ;;  %3600 = vmatprep.subr.bf16.mxu1 %v4152_v22  ;;  %v4205_v19 = vld [vmem:[#allocation7 + $0x628] ss:$20 sps:$4 sm:$0xff]  }
 0x204   :  { %v4206_v2 = vld [vmem:[#allocation7 + $0x8a8] ss:$20 sps:$4 sm:$0xff]  }
 0x205   :  { %2449 = vmatmul.mubr.bf16.vlgmr.msra.gmra.mrb[0].mxu0 %v4626_v23  ;;  %2613 = vmatmul.mubr.bf16.vlgmr.msra.gmra.mrb[8].mxu1 %v4626_v23  ;;  %v4207_v22 = vld [vmem:[#allocation10 + $0x40] sm:$0xff]  }
 0x206   :  { %3579 = vmatpush3.bf16.msra.mxu0 %v4153_v21  ;;  %2653 = vmatprep.mubr.bf16.mxu0 %v4578_v49  ;;  %v4166_v49 = vld [vmem:[#allocation7 + $0x308] ss:$20 sps:$4 sm:$0xff]  }
 0x207   :  { %3601 = vmatpush3.bf16.msra.mxu1 %v4154_v24  ;;  %2693 = vmatprep.mubr.bf16.mxu1 %v4588_v63  ;;  %v4168_v63 = vld [vmem:[#allocation7 + $0x470] ss:$20 sps:$4 sm:$0xff]  }
 0x208   :  { %3580 = vmatprep.subr.bf16.mxu0 %v4155_v25  ;;  %3602 = vmatprep.subr.bf16.mxu1 %v4156_v26  ;;  %v4208_v21 = vld [vmem:[#allocation10 + $0xc0] sm:$0xff]   ;;  %v4211_v26 = vld [vmem:[#allocation10 + $0x48] sm:$0xff]  }
 0x209   :  { %v4209_v24 = vld [vmem:[#allocation10] sm:$0xff]  }
 0x20a   :  { %3581 = vmatpush3.bf16.msra.mxu0 %v4157_v27  ;;  %v4210_v25 = vld [vmem:[#allocation10 + $0x80] sm:$0xff]   ;;  %v4212_v27 = vld [vmem:[#allocation10 + $0xc8] sm:$0xff]  }
 0x20b   :  { %3603 = vmatpush3.bf16.msra.mxu1 %v4158_v28  ;;  %3582 = vmatprep.subr.bf16.mxu0 %v4159_v29  ;;  %v4213_v28 = vld [vmem:[#allocation10 + $0x8] sm:$0xff]  }
 0x20c   :  { %3604 = vmatprep.subr.bf16.mxu1 %v4160_v30  ;;  %v4214_v29 = vld [vmem:[#allocation10 + $0x88] sm:$0xff]   ;;  %v4215_v30 = vld [vmem:[#allocation10 + $0x50] sm:$0xff]  }
 0x20e   :  { %3583 = vmatpush3.bf16.msra.mxu0 %v4161_v31  ;;  %v4216_v31 = vld [vmem:[#allocation10 + $0xd0] sm:$0xff]  }
 0x20f   :  { %3605 = vmatpush3.bf16.msra.mxu1 %v4162_v32  ;;  %3584 = vmatprep.subr.bf16.mxu0 %v4163_v33  ;;  %v4217_v32 = vld [vmem:[#allocation10 + $0x10] sm:$0xff]  }
 0x210   :  { %3606 = vmatprep.subr.bf16.mxu1 %v4164_v34  ;;  %v4218_v33 = vld [vmem:[#allocation10 + $0x90] sm:$0xff]   ;;  %v4219_v34 = vld [vmem:[#allocation10 + $0x58] sm:$0xff]  }
 0x212   :  { %3585 = vmatpush3.bf16.msra.mxu0 %v4165_v39  ;;  %v4220_v39 = vld [vmem:[#allocation10 + $0xd8] sm:$0xff]  }
 0x213   :  { %3607 = vmatpush3.bf16.msra.mxu1 %v4166_v49  ;;  %3586 = vmatprep.subr.bf16.mxu0 %v4167_v1  ;;  %v4223_v49 = vld [vmem:[#allocation10 + $0x60] sm:$0xff]  }
 0x214   :  { %3608 = vmatprep.subr.bf16.mxu1 %v4168_v63  ;;  %v4224_v1 = vld [vmem:[#allocation10 + $0xe0] sm:$0xff]  }
 0x215   :  { %v4225_v63 = vld [vmem:[#allocation10 + $0x20] sm:$0xff]  }
 0x216   :  { %3587 = vmatpush3.bf16.msra.mxu0 %v4169_v41  ;;  %v4226_v41 = vld [vmem:[#allocation10 + $0xa0] sm:$0xff]  }
 0x217   :  { %3609 = vmatpush3.bf16.msra.mxu1 %v4170_v43  ;;  %3588 = vmatprep.subr.bf16.mxu0 %v4171_v44  ;;  %v4227_v43 = vld [vmem:[#allocation10 + $0x68] sm:$0xff]  }
 0x218   :  { %3610 = vmatprep.subr.bf16.mxu1 %v4172_v45  ;;  %v4228_v44 = vld [vmem:[#allocation10 + $0xe8] sm:$0xff]  }
 0x219   :  { %v4229_v45 = vld [vmem:[#allocation10 + $0x28] sm:$0xff]  }
 0x21a   :  { %3589 = vmatpush3.bf16.msra.mxu0 %v4173_v46  ;;  %v4230_v46 = vld [vmem:[#allocation10 + $0xa8] sm:$0xff]  }
 0x21b   :  { %3611 = vmatpush3.bf16.msra.mxu1 %v4174_v47  ;;  %3590 = vmatprep.subr.bf16.mxu0 %v4175_v48  ;;  %v4231_v47 = vld [vmem:[#allocation10 + $0x70] sm:$0xff]  }
 0x21c   :  { %3612 = vmatprep.subr.bf16.mxu1 %v4176_v50  ;;  %v4232_v48 = vld [vmem:[#allocation10 + $0xf0] sm:$0xff]  }
 0x21d   :  { %v4233_v50 = vld [vmem:[#allocation10 + $0x30] sm:$0xff]  }
 0x21e   :  { %3591 = vmatpush3.bf16.msra.mxu0 %v4177_v54  ;;  %v4234_v54 = vld [vmem:[#allocation10 + $0xb0] sm:$0xff]  }
 0x21f   :  { %3613 = vmatpush3.bf16.msra.mxu1 %v4178_v55  ;;  %3592 = vmatprep.subr.bf16.mxu0 %v4179_v56  ;;  %v4235_v55 = vld [vmem:[#allocation10 + $0x78] sm:$0xff]  }
 0x220   :  { %3614 = vmatprep.subr.bf16.mxu1 %v4180_v57  ;;  %v4236_v56 = vld [vmem:[#allocation10 + $0xf8] sm:$0xff]  }
 0x221   :  { %v4237_v57 = vld [vmem:[#allocation10 + $0x38] sm:$0xff]  }
 0x222   :  { %3593 = vmatpush3.bf16.msra.mxu0 %v4181_v58  ;;  %v4238_v58 = vld [vmem:[#allocation10 + $0xb8] sm:$0xff]  }
 0x223   :  { %3615 = vmatpush3.bf16.msra.mxu1 %v4182_v59  ;;  %3622 = vmatprep.subr.bf16.mxu0 %v4183_v60  ;;  %v810_v59 = vld [vmem:[#allocation9] sm:$0x1f] }
 0x224   :  { %3715 = vmatprep.subr.bf16.mxu1 %v4424_v0  ;;  %v815_v60 = vrot.slane %v810_v59, %v140_v36 }
 0x225   :  { %2654 = vmatmul.mubr.bf16.vlgmr.msra.gmra.mrb[4].mxu0 %v4582_v53  ;;  %v4191_v53 = vld [vmem:[#allocation7 + $0x7e0] ss:$20 sps:$4 sm:$0xff]  }
 0x226   :  { %2694 = vmatmul.mubr.bf16.vlgmr.msra.gmra.mrb[12].mxu1 %v4606_v16  ;;  %3623 = vmatpush3.bf16.msra.mxu0 %v4184_v61  ;;  %v4193_v16 = vld [vmem:[#allocation7 + $0x588] ss:$20 sps:$4 sm:$0xff]   ;;  %v823_v61 = vrot.slane %v810_v59, %v148_v51 }
 0x227   :  { %2733 = vmatprep.mubr.bf16.mxu0 %v4608_v20  ;;  %3716 = vmatpush3.bf16.msra.mxu1 %v4185_v62  ;;  %v4194_v20 = vld [vmem:[#allocation7 + $0x808] ss:$20 sps:$4 sm:$0xff]   ;;  %v819_v62 = vrot.slane %v810_v59, %v144_v38 }
 0x228   :  { %3624 = vmatprep.subr.bf16.mxu0 %v4186_v3  ;;  %3717 = vmatprep.subr.bf16.mxu1 %v4424_v0  ;;  %v827_v3 = vrot.slane %v810_v59, %v152_v42 }
 0x229   :  { %3731 = vmatprep.mubr.msk.bf16.mxu1 %vm4426_vm1, %v4424_v0 }
 0x22a   :  { %3625 = vmatpush3.bf16.msra.mxu0 %v4187_v4 }
 0x22b   :  { %3718 = vmatpush3.bf16.msra.mxu1 %v4188_v5  ;;  %3626 = vmatprep.subr.bf16.mxu0 %v4189_v6 }
 0x22c   :  { %3719 = vmatprep.subr.bf16.mxu1 %v4424_v0 }
 0x22e   :  { %3627 = vmatpush3.bf16.msra.mxu0 %v4190_v7 }
 0x22f   :  { %3720 = vmatpush3.bf16.msra.mxu1 %v4191_v53  ;;  %3628 = vmatprep.subr.bf16.mxu0 %v4192_v8 }
 0x230   :  { %3721 = vmatprep.subr.bf16.mxu1 %v4424_v0 }
 0x232   :  { %3629 = vmatpush3.bf16.msra.mxu0 %v4193_v16 }
 0x233   :  { %3722 = vmatpush3.bf16.msra.mxu1 %v4194_v20  ;;  %3630 = vmatprep.subr.bf16.mxu0 %v4195_v9 }
 0x234   :  { %3723 = vmatprep.subr.bf16.mxu1 %v4424_v0 }
 0x236   :  { %3631 = vmatpush3.bf16.msra.mxu0 %v4196_v10 }
 0x237   :  { %3724 = vmatpush3.bf16.msra.mxu1 %v4197_v11  ;;  %3632 = vmatprep.subr.bf16.mxu0 %v4198_v12 }
 0x238   :  { %3725 = vmatprep.subr.bf16.mxu1 %v4424_v0 }
 0x23a   :  { %3633 = vmatpush3.bf16.msra.mxu0 %v4199_v13 }
 0x23b   :  { %3726 = vmatpush3.bf16.msra.mxu1 %v4200_v14  ;;  %3634 = vmatprep.subr.bf16.mxu0 %v4201_v52 }
 0x23c   :  { %3727 = vmatprep.subr.bf16.mxu1 %v4424_v0 }
 0x23e   :  { %3635 = vmatpush3.bf16.msra.mxu0 %v4202_v17  ;;  %v4239_v17 = vld [vmem:[#allocation10 + $0x100] sm:$0xff]  }
 0x23f   :  { %3728 = vmatpush3.bf16.msra.mxu1 %v4203_v18  ;;  %3636 = vmatprep.subr.bf16.mxu0 %v4204_v37  ;;  %v4240_v37 = vld [vmem:[#allocation10 + $0x108] sm:$0xff]  }
 0x240   :  { %3729 = vmatprep.subr.bf16.mxu1 %v4424_v0 }
 0x242   :  { %3637 = vmatpush3.bf16.msra.mxu0 %v4205_v19  ;;  %v4241_v19 = vld [vmem:[#allocation10 + $0x110] sm:$0xff]  }
 0x243   :  { %3730 = vmatpush3.bf16.msra.mxu1 %v4206_v2  ;;  %3653 = vmatprep.subr.bf16.mxu0 %v4207_v22  ;;  %v4242_v2 = vld [vmem:[#allocation10 + $0x118] sm:$0xff]   ;;  %v4243_v22 = vld [vmem:[#allocation10 + $0x120] sm:$0xff]  }
 0x244   :  { %3675 = vmatprep.subr.bf16.mxu1 %v4208_v21  ;;  %v4244_v21 = vld [vmem:[#allocation10 + $0x128] sm:$0xff]  }
 0x245   :  { %2734 = vmatmul.mubr.bf16.vlgmr.msra.gmra.mrb[8].mxu0 %v4619_v40  ;;  %v4221_v40 = vld [vmem:[#allocation10 + $0x18] sm:$0xff]  }
 0x246   :  { %3732 = vmatmul.mubr.bf16.vlgmr.msra.gmra.mrb[16].mxu1 %v4626_v23  ;;  %3654 = vmatpush3.bf16.msra.mxu0 %v4209_v24  ;;  %v4222_v23 = vld [vmem:[#allocation10 + $0x98] sm:$0xff]   ;;  %v4245_v24 = vld [vmem:[#allocation10 + $0x130] sm:$0xff]  }
 0x247   :  { %3676 = vmatpush3.bf16.msra.mxu1 %v4210_v25  ;;  %3655 = vmatprep.subr.bf16.mxu0 %v4211_v26  ;;  %v831_v26 = vrot.slane %v810_v59, %v156_v15 }
 0x248   :  { %3677 = vmatprep.subr.bf16.mxu1 %v4212_v27 }
 0x24a   :  { %3656 = vmatpush3.bf16.msra.mxu0 %v4213_v28 }
 0x24b   :  { %3678 = vmatpush3.bf16.msra.mxu1 %v4214_v29  ;;  %3657 = vmatprep.subr.bf16.mxu0 %v4215_v30 }
 0x24c   :  { %3679 = vmatprep.subr.bf16.mxu1 %v4216_v31 }
 0x24e   :  { %3658 = vmatpush3.bf16.msra.mxu0 %v4217_v32  ;;  %v4246_v32 = vld [vmem:[#allocation10 + $0x138] sm:$0xff]  }
 0x24f   :  { %3680 = vmatpush3.bf16.msra.mxu1 %v4218_v33  ;;  %3659 = vmatprep.subr.bf16.mxu0 %v4219_v34 }
 0x250   :  { %3681 = vmatprep.subr.bf16.mxu1 %v4220_v39 }
 0x252   :  { %3660 = vmatpush3.bf16.msra.mxu0 %v4221_v40 }
 0x253   :  { %3682 = vmatpush3.bf16.msra.mxu1 %v4222_v23  ;;  %3661 = vmatprep.subr.bf16.mxu0 %v4223_v49 }
 0x254   :  { %3683 = vmatprep.subr.bf16.mxu1 %v4224_v1 }
 0x256   :  { %3662 = vmatpush3.bf16.msra.mxu0 %v4225_v63 }
 0x257   :  { %3684 = vmatpush3.bf16.msra.mxu1 %v4226_v41  ;;  %3663 = vmatprep.subr.bf16.mxu0 %v4227_v43 }
 0x258   :  { %3685 = vmatprep.subr.bf16.mxu1 %v4228_v44 }
 0x25a   :  { %3664 = vmatpush3.bf16.msra.mxu0 %v4229_v45 }
 0x25b   :  { %3686 = vmatpush3.bf16.msra.mxu1 %v4230_v46  ;;  %3665 = vmatprep.subr.bf16.mxu0 %v4231_v47 }
 0x25c   :  { %3687 = vmatprep.subr.bf16.mxu1 %v4232_v48 }
 0x25e   :  { %3666 = vmatpush3.bf16.msra.mxu0 %v4233_v50 }
 0x25f   :  { %3688 = vmatpush3.bf16.msra.mxu1 %v4234_v54  ;;  %3667 = vmatprep.subr.bf16.mxu0 %v4235_v55 }
 0x260   :  { %3689 = vmatprep.subr.bf16.mxu1 %v4236_v56  ;;  %v3533_v56 = vld [vmem:[#allocation12] ss:$0 sm:$0xff] }
 0x262   :  { %3668 = vmatpush3.bf16.msra.mxu0 %v4237_v57 }
 0x263   :  { %3690 = vmatpush3.bf16.msra.mxu1 %v4238_v58  ;;  %3735 = vmatprep.subr.bf16.mxu0 %v4424_v0 }
 0x2d8   :  { %v2450_v4 = vpop.f32.mrb[0].mxu0  ;;  %v2614_v5 = vpop.f32.mrb[8].mxu1 }
 0x2d9   :  { %v3770_v6 = vadd.f32 %v2450_v4, %v815_v60  ;;  %v3772_v7 = vadd.f32 %v2614_v5, %v823_v61  ;;  %v2452_v53 = vpop.f32.mrb[1].mxu0  ;;  %v2616_v8 = vpop.f32.mrb[9].mxu1 }
 0x2da   :  { %v3771_v16 = vadd.f32 %v2452_v53, %v819_v62  ;;  %v3773_v20 = vadd.f32 %v2616_v8, %v827_v3  ;;  %v2454_v9 = vpop.f32.mrb[2].mxu0  ;;  %v2618_v10 = vpop.f32.mrb[10].mxu1 }
 0x2db   :  { %v2781_v36 = vmax.f32 %v3770_v6, 0.0  ;;  %v2783_v11 = vmax.f32 %v3772_v7, 0.0  ;;  %v2455_v12 = vpop.f32.mrb[3].mxu0  ;;  %v2619_v51 = vpop.f32.mrb[11].mxu1 }
 0x2dc   :  { %v2782_v13 = vmax.f32 %v3771_v16, 0.0  ;;  %v2784_v14 = vmax.f32 %v3773_v20, 0.0 }
 0x2dd   :  { %v2786_v42 = vpack.c.bf16 %v2781_v36, %v2781_v36  ;;  %v2788_v18 = vpack.c.bf16 %v2783_v11, %v2783_v11 }
 0x2de   :  { %v2787_v38 = vpack.c.bf16 %v2782_v13, %v2782_v13  ;;  %v2789_v52 = vpack.c.bf16 %v2784_v14, %v2784_v14 }
 0x2e0   :  { %3150 = vmatprep.mubr.bf16.mxu0 %v2787_v38  ;;  %3190 = vmatprep.mubr.bf16.mxu1 %v2789_v52 }
 0x2e1   :  { %3151 = vmatmul.mubr.bf16.vlgmr.msra.gmra.mrb[12].mxu0 %v2786_v42  ;;  %3191 = vmatmul.mubr.bf16.vlgmr.msra.gmra.mrb[20].mxu1 %v2788_v18 }
 0x2e2   :  { %3736 = vmatpush3.bf16.msra.mxu0 %v4239_v17  ;;  %3751 = vmatprep.mubr.msk.bf16.mxu0 %vm4426_vm1, %v4424_v0 }
 0x2e3   :  { %3737 = vmatprep.subr.bf16.mxu0 %v4424_v0 }
 0x2e6   :  { %3738 = vmatpush3.bf16.msra.mxu0 %v4240_v37 }
 0x2e7   :  { %3739 = vmatprep.subr.bf16.mxu0 %v4424_v0 }
 0x2ea   :  { %3740 = vmatpush3.bf16.msra.mxu0 %v4241_v19 }
 0x2eb   :  { %3741 = vmatprep.subr.bf16.mxu0 %v4424_v0 }
 0x2ee   :  { %3742 = vmatpush3.bf16.msra.mxu0 %v4242_v2 }
 0x2ef   :  { %3743 = vmatprep.subr.bf16.mxu0 %v4424_v0 }
 0x2f2   :  { %3744 = vmatpush3.bf16.msra.mxu0 %v4243_v22 }
 0x2f3   :  { %3745 = vmatprep.subr.bf16.mxu0 %v4424_v0 }
 0x2f6   :  { %3746 = vmatpush3.bf16.msra.mxu0 %v4244_v21 }
 0x2f7   :  { %3747 = vmatprep.subr.bf16.mxu0 %v4424_v0 }
 0x2f8   :  { %v3594_v25 = vpop.f32.mrb[4].mxu0 }
 0x2f9   :  { %v3616_v27 = vpop.f32.mrb[12].mxu1  ;;  %v3595_v28 = vpop.f32.mrb[5].mxu0 }
 0x2fa   :  { %v3596_v29 = vadd.f32 %v3595_v28, %v3594_v25  ;;  %v3617_v30 = vpop.f32.mrb[13].mxu1  ;;  %v3597_v31 = vpop.f32.mrb[6].mxu0  ;;  %3748 = vmatpush3.bf16.msra.mxu0 %v4245_v24 }
 0x2fb   :  { %v3618_v33 = vadd.f32 %v3617_v30, %v3616_v27  ;;  %v3619_v34 = vpop.f32.mrb[14].mxu1  ;;  %v3598_v39 = vpop.f32.mrb[7].mxu0  ;;  %3749 = vmatprep.subr.bf16.mxu0 %v4424_v0 }
 0x2fc   :  { %v2656_v40 = vadd.f32 %v3596_v29, %v831_v26  ;;  %v3620_v23 = vpop.f32.mrb[15].mxu1 }
 0x2fe   :  { %v2696_v49 = vadd.f32 %v3618_v33, %v2656_v40  ;;  %3750 = vmatpush3.bf16.msra.mxu0 %v4246_v32 }
 0x318   :  { %v3638_v1 = vpop.f32.mrb[8].mxu0 }
 0x319   :  { %v2775_v63 = vpop.f32.mrb[16].mxu1  ;;  %v3639_v35 = vpop.f32.mrb[9].mxu0 }
 0x31a   :  { %v3640_v15 = vadd.f32 %v3639_v35, %v3638_v1  ;;  %v3733_v41 = vpop.f32.mrb[17].mxu1  ;;  %v3641_v43 = vpop.f32.mrb[10].mxu0 }
 0x31b   :  { %v2778_v44 = vpop.f32.mrb[18].mxu1  ;;  %v3642_v45 = vpop.f32.mrb[11].mxu0 }
 0x31c   :  { %v2736_v46 = vadd.f32 %v3640_v15, %v2696_v49  ;;  %v3734_v47 = vpop.f32.mrb[19].mxu1 }
 0x31e   :  { %v2776_v48 = vadd.f32 %v2775_v63, %v2736_v46 }
 0x320   :  { %v2785_v50 = vmax.f32 %v2776_v48, 0.0 }
 0x322   :  { %v2790_v54 = vpack.c.bf16 %v2785_v50, %v2785_v50 }
 0x324   :  { %3752 = vmatmul.mubr.bf16.vlgmr.msra.gmra.mrb[16].mxu0 %v2790_v54 }
 0x3b4   :  { %v3669_v55 = vpop.f32.mrb[12].mxu0  ;;  %v3691_v0 = vpop.f32.mrb[20].mxu1 }
 0x3b5   :  { %v3670_v57 = vpop.f32.mrb[13].mxu0  ;;  %v3692_v58 = vpop.f32.mrb[21].mxu1 }
 0x3b6   :  { %v3671_v59 = vadd.f32 %v3670_v57, %v3669_v55  ;;  %v3693_v60 = vadd.f32 %v3692_v58, %v3691_v0  ;;  %v3672_v61 = vpop.f32.mrb[14].mxu0  ;;  %v3694_v62 = vpop.f32.mrb[22].mxu1 }
 0x3b7   :  { %v3673_v3 = vpop.f32.mrb[15].mxu0  ;;  %v3695_v4 = vpop.f32.mrb[23].mxu1 }
 0x3b8   :  { %v3153_v5 = vadd.f32 %v3671_v59, %v3533_v56 }
 0x3ba   :  { %v3193_v6 = vadd.f32 %v3693_v60, %v3153_v5 }
 0x3f7   :  { %v3232_v7 = vpop.f32.mrb[16].mxu0 }
 0x3f8   :  { %v3233_v53 = vadd.f32 %v3232_v7, %v3193_v6  ;;  %v3753_v8 = vpop.f32.mrb[17].mxu0 }
 0x3f9   :  { %v3235_v16 = vpop.f32.mrb[18].mxu0 }
 0x3fa   :  { %4247 = vtanh.f32 %v3233_v53  ;;  %v3754_v20 = vpop.f32.mrb[19].mxu0 }
 0x404   :  { %v4248_v9 = vpop.eup %4247 }
 0x405   :  { %3240 = vst.msk [vmem:[%s4677_s7] sm:$0xff] %vm3239_vm2, %v4248_v9 }
 0x406   :  { %3245 = vsyncpa [#allocation3], 1 }
 0x407   :  { %3246 = vsyncpa [#allocation5], 1 }
 0x408   :  { %3247 = vsyncpa [#allocation8], 1 }
 0x409   :  { %3248 = vsyncpa [#allocation11], 1 }

</bundles_post_ra>
